<compile_context>
chip_gen: v7x
topology: tpu7x:2x2x1
jax: 0.10.0
libtpu: 0.0.40
codegen_flags: <defaults>
</compile_context>

<pallas_src>
import functools

import jax
import jax.numpy as jnp
from jax import lax
from jax.experimental import pallas as pl
from jax.experimental.pallas import tpu as pltpu


def _round_up(x, m):
    return ((x + m - 1) // m) * m


def deep_svdd_kernel(x_ref, w1_ref, w2_ref, w3_ref, w4_ref, w5_ref, wb_ref, out_ref):
    f32 = jnp.float32
    cdt = w1_ref.dtype  # compute dtype for the MXU path (bf16 by default)

    # ---- encoder: four MXU matmuls, f32 accumulation, ReLU on the VPU ----
    # x arrives as f32 straight from HBM; cast to the MXU compute dtype in-kernel so the
    # wrapper never makes an extra pad/convert pass over the input.
    h = jnp.dot(x_ref[...].astype(cdt), w1_ref[...], preferred_element_type=f32)  # (TB, 128)
    h = jnp.maximum(h, 0.0)
    h = jnp.dot(h.astype(cdt), w2_ref[...], preferred_element_type=f32)           # (TB, 64)
    h = jnp.maximum(h, 0.0)
    # Dropout(0.0) == identity
    h = jnp.dot(h.astype(cdt), w3_ref[...], preferred_element_type=f32)           # (TB, 32)
    h = jnp.maximum(h, 0.0)
    h = jnp.dot(h.astype(cdt), w4_ref[...], preferred_element_type=f32)           # (TB, 16)
    h = jnp.maximum(h, 0.0)
    # Dropout(0.0) == identity

    # ---- encoder tail Linear(16, 1) + Sigmoid: N=1 -> VPU multiply + row reduce ----
    # w5_ref holds w5.T as a (1, 16) row; sum over the last axis == h @ w5.
    s = jax.nn.sigmoid(jnp.sum(h * w5_ref[...], axis=-1, keepdims=True))          # (TB, 1)

    # ---- bottleneck Linear(1, out) + Sigmoid: K=1 -> outer-product broadcast ----
    # wb_ref is (1, out_dim); output is written at its real width (masked vst is cheap,
    # the store slot is nowhere near saturated).
    e = jax.nn.sigmoid(s * wb_ref[...])                                            # (TB, out_dim)
    out_ref[...] = e.astype(out_ref.dtype)


@functools.partial(jax.jit, static_argnames=("block_b", "compute_dtype"))
def deep_svdd_forward(x, weights, *, block_b=1024, compute_dtype=jnp.bfloat16):
    """x: (B, F) f32; weights: 6 matrices stored (in, out)."""
    w1, w2, w3, w4, w5, wb = weights
    B, F = x.shape
    out_dim = wb.shape[1]

    # ---- batch tile selection ----
    # Big tiles amortize the ~0.35 us/step fixed cost; cap at ceil(B/2) so the grid has
    # >= 2 steps and v7x's two TensorCores can both take work (free on v5e/v6e).
    TB = max(16, _round_up(block_b, 16))
    TB = min(TB, max(16, _round_up((B + 1) // 2, 16)))
    # VMEM guard (v7x: 64 MiB physical / 32 MiB default scoped): keep the double-buffered
    # f32 x tile well under budget even for very wide feature dims.
    while TB > 16 and TB * F * 4 > (8 << 20):
        TB = max(16, TB // 2)

    B_pad = _round_up(max(B, TB), TB)
    if B_pad != B:
        x = jnp.pad(x, ((0, B_pad - B), (0, 0)))   # batch-dim pad only; no feature pad.

    # MXU-path weights in the compute dtype (f32 accumulate happens in-kernel).
    w1_c, w2_c, w3_c, w4_c = (w.astype(compute_dtype) for w in (w1, w2, w3, w4))
    # Tail operands stay f32 (VPU/EUP path; also correct on v5e which lacks bf16 VPU).
    w5_row = w5.reshape(1, -1).astype(jnp.float32)     # (1, 16)
    wb_row = wb.reshape(1, -1).astype(jnp.float32)     # (1, out_dim) -- no lane padding.

    grid = (B_pad // TB,)
    w_itemsize = jnp.dtype(compute_dtype).itemsize
    mxu_flops = 2 * B_pad * (F * 128 + 128 * 64 + 64 * 32 + 32 * 16)
    tail_flops = B_pad * (2 * 16 + out_dim)
    weight_bytes = (F * 128 + 128 * 64 + 64 * 32 + 32 * 16) * w_itemsize + (16 + out_dim) * 4
    cost = pl.CostEstimate(
        flops=int(mxu_flops + tail_flops),
        transcendentals=int(B_pad * (1 + out_dim)),
        bytes_accessed=int(B_pad * F * 4 + weight_bytes + B_pad * out_dim * 4),
    )

    out_padded = pl.pallas_call(
        deep_svdd_kernel,
        out_shape=jax.ShapeDtypeStruct((B_pad, out_dim), jnp.float32),
        grid=grid,
        in_specs=[
            # Streamed activations: raw f32, block width == full feature dim (legal even
            # when F % 128 != 0 since it equals the array dim); cast happens in-kernel.
            pl.BlockSpec((TB, F), lambda i: (i, 0)),
            # Weights: constant index_maps -> fetched once, VMEM-resident.
            pl.BlockSpec((F, 128), lambda i: (0, 0)),
            pl.BlockSpec((128, 64), lambda i: (0, 0)),
            pl.BlockSpec((64, 32), lambda i: (0, 0)),
            pl.BlockSpec((32, 16), lambda i: (0, 0)),
            pl.BlockSpec((1, 16), lambda i: (0, 0)),
            pl.BlockSpec((1, out_dim), lambda i: (0, 0)),
        ],
        out_specs=pl.BlockSpec((TB, out_dim), lambda i: (i, 0)),
        compiler_params=pltpu.CompilerParams(dimension_semantics=("parallel",)),
        cost_estimate=cost,
    )(x, w1_c, w2_c, w3_c, w4_c, w5_row, wb_row)

    # Only the batch trim remains (output already written at its real width); lax.slice
    # lets XLA fuse the trim into the consumer instead of a standalone copy pass.
    return lax.slice(out_padded, (0, 0), (B, out_dim))


def _torch_linear_init(key, fan_in, fan_out):
    # Mimic torch.nn.Linear default init: U(-1/sqrt(fan_in), 1/sqrt(fan_in)).
    bound = 1.0 / (fan_in ** 0.5)
    return jax.random.uniform(key, (fan_in, fan_out), jnp.float32, -bound, bound)


def make_params(n_features, output_dim=32, key=jax.random.PRNGKey(0)):
    dims = [(n_features, 128), (128, 64), (64, 32), (32, 16), (16, 1), (1, output_dim)]
    keys = jax.random.split(key, len(dims))
    return [_torch_linear_init(k, fi, fo) for k, (fi, fo) in zip(keys, dims)]


def reference_forward(x, weights, compute_dtype=jnp.bfloat16):
    """Pure-JAX reference mirroring the kernel's precision choices."""
    w1, w2, w3, w4, w5, wb = weights
    h = x.astype(jnp.float32)
    for w in (w1, w2, w3, w4):
        h = jnp.maximum(
            jnp.dot(h.astype(compute_dtype), w.astype(compute_dtype),
                    preferred_element_type=jnp.float32), 0.0)
    s = jax.nn.sigmoid(
        jnp.sum(h * w5.reshape(1, -1).astype(jnp.float32), axis=-1, keepdims=True))
    return jax.nn.sigmoid(s * wb.reshape(1, -1).astype(jnp.float32))


if __name__ == "__main__":
    # Deliberately non-aligned small shapes: B=1000 exercises batch padding + a 2-step
    # grid (TB capped at ceil(B/2) -> 512), F=100 exercises an unaligned feature dim
    # handled in-kernel without any wrapper padding.
    B, F, OUT = 1000, 100, 32
    key = jax.random.PRNGKey(0)
    kx, kp = jax.random.split(key)
    x = jax.random.normal(kx, (B, F), jnp.float32)
    weights = make_params(F, output_dim=OUT, key=kp)

    out = deep_svdd_forward(x, weights, block_b=1024, compute_dtype=jnp.bfloat16)
    out = jax.block_until_ready(out)

    ref = reference_forward(x, weights, compute_dtype=jnp.bfloat16)
    assert out.shape == (B, OUT), out.shape
    err = float(jnp.max(jnp.abs(out - ref)))
    assert err < 1e-3, f"mismatch vs. JAX reference: max abs err {err}"
    print("KERNEL_OK")
</pallas_src>

<mosaic_0001>
module attributes {stable_mosaic.version = 11 : i64} {
  func.func @deep_svdd_kernel(%arg0: i32, %arg1: memref<512x100xf32, #tpu.memory_space<vmem>>, %arg2: memref<100x128xbf16, #tpu.memory_space<vmem>>, %arg3: memref<128x64xbf16, #tpu.memory_space<vmem>>, %arg4: memref<64x32xbf16, #tpu.memory_space<vmem>>, %arg5: memref<32x16xbf16, #tpu.memory_space<vmem>>, %arg6: memref<1x16xf32, #tpu.memory_space<vmem>>, %arg7: memref<1x32xf32, #tpu.memory_space<vmem>>, %arg8: memref<512x32xf32, #tpu.memory_space<vmem>>) attributes {dimension_semantics = [#tpu.dimension_semantics<parallel>], iteration_bounds = array<i64: 2>, scalar_prefetch = 0 : i64, scratch_operands = 0 : i64, tpu.core_type = #tpu.core_type<tc>, window_params = [{transform_indices = @transform_0, window_bounds = array<i64: 512, 100>}, {pipeline_mode = #tpu.pipeline_mode<synchronous>, transform_indices = @transform_1, window_bounds = array<i64: 100, 128>}, {pipeline_mode = #tpu.pipeline_mode<synchronous>, transform_indices = @transform_2, window_bounds = array<i64: 128, 64>}, {pipeline_mode = #tpu.pipeline_mode<synchronous>, transform_indices = @transform_3, window_bounds = array<i64: 64, 32>}, {pipeline_mode = #tpu.pipeline_mode<synchronous>, transform_indices = @transform_4, window_bounds = array<i64: 32, 16>}, {pipeline_mode = #tpu.pipeline_mode<synchronous>, transform_indices = @transform_5, window_bounds = array<i64: 1, 16>}, {pipeline_mode = #tpu.pipeline_mode<synchronous>, transform_indices = @transform_6, window_bounds = array<i64: 1, 32>}, {transform_indices = @transform_7, window_bounds = array<i64: 512, 32>}]} {
    %c0 = arith.constant 0 : index
    %c0_0 = arith.constant 0 : index
    %0 = vector.load %arg1[%c0, %c0_0] : memref<512x100xf32, #tpu.memory_space<vmem>>, vector<512x100xf32>
    %1 = arith.truncf %0 : vector<512x100xf32> to vector<512x100xbf16>
    %c0_1 = arith.constant 0 : index
    %c0_2 = arith.constant 0 : index
    %2 = vector.load %arg2[%c0_1, %c0_2] : memref<100x128xbf16, #tpu.memory_space<vmem>>, vector<100x128xbf16>
    %cst = arith.constant dense<0.000000e+00> : vector<512x128xf32>
    %3 = tpu.matmul %1, %2, %cst {dimension_numbers = #tpu.dot_dimension_numbers<[1], [0], [0], [1], [0, 0, 1, 1], [], []>} : vector<512x100xbf16>, vector<100x128xbf16>, vector<512x128xf32> -> vector<512x128xf32>
    %cst_3 = arith.constant 0.000000e+00 : f32
    %4 = vector.broadcast %cst_3 : f32 to vector<512x128xf32>
    %5 = arith.maximumf %3, %4 : vector<512x128xf32>
    %6 = arith.truncf %5 : vector<512x128xf32> to vector<512x128xbf16>
    %c0_4 = arith.constant 0 : index
    %c0_5 = arith.constant 0 : index
    %7 = vector.load %arg3[%c0_4, %c0_5] : memref<128x64xbf16, #tpu.memory_space<vmem>>, vector<128x64xbf16>
    %cst_6 = arith.constant dense<0.000000e+00> : vector<512x64xf32>
    %8 = tpu.matmul %6, %7, %cst_6 {dimension_numbers = #tpu.dot_dimension_numbers<[1], [0], [0], [1], [0, 0, 1, 1], [], []>} : vector<512x128xbf16>, vector<128x64xbf16>, vector<512x64xf32> -> vector<512x64xf32>
    %cst_7 = arith.constant 0.000000e+00 : f32
    %9 = vector.broadcast %cst_7 : f32 to vector<512x64xf32>
    %10 = arith.maximumf %8, %9 : vector<512x64xf32>
    %11 = arith.truncf %10 : vector<512x64xf32> to vector<512x64xbf16>
    %c0_8 = arith.constant 0 : index
    %c0_9 = arith.constant 0 : index
    %12 = vector.load %arg4[%c0_8, %c0_9] : memref<64x32xbf16, #tpu.memory_space<vmem>>, vector<64x32xbf16>
    %cst_10 = arith.constant dense<0.000000e+00> : vector<512x32xf32>
    %13 = tpu.matmul %11, %12, %cst_10 {dimension_numbers = #tpu.dot_dimension_numbers<[1], [0], [0], [1], [0, 0, 1, 1], [], []>} : vector<512x64xbf16>, vector<64x32xbf16>, vector<512x32xf32> -> vector<512x32xf32>
    %cst_11 = arith.constant 0.000000e+00 : f32
    %14 = vector.broadcast %cst_11 : f32 to vector<512x32xf32>
    %15 = arith.maximumf %13, %14 : vector<512x32xf32>
    %16 = arith.truncf %15 : vector<512x32xf32> to vector<512x32xbf16>
    %c0_12 = arith.constant 0 : index
    %c0_13 = arith.constant 0 : index
    %17 = vector.load %arg5[%c0_12, %c0_13] : memref<32x16xbf16, #tpu.memory_space<vmem>>, vector<32x16xbf16>
    %cst_14 = arith.constant dense<0.000000e+00> : vector<512x16xf32>
    %18 = tpu.matmul %16, %17, %cst_14 {dimension_numbers = #tpu.dot_dimension_numbers<[1], [0], [0], [1], [0, 0, 1, 1], [], []>} : vector<512x32xbf16>, vector<32x16xbf16>, vector<512x16xf32> -> vector<512x16xf32>
    %cst_15 = arith.constant 0.000000e+00 : f32
    %19 = vector.broadcast %cst_15 : f32 to vector<512x16xf32>
    %20 = arith.maximumf %18, %19 : vector<512x16xf32>
    %c0_16 = arith.constant 0 : index
    %c0_17 = arith.constant 0 : index
    %21 = vector.load %arg6[%c0_16, %c0_17] : memref<1x16xf32, #tpu.memory_space<vmem>>, vector<1x16xf32>
    %22 = vector.broadcast %21 : vector<1x16xf32> to vector<512x16xf32>
    %23 = arith.mulf %20, %22 : vector<512x16xf32>
    %cst_18 = arith.constant dense<0.000000e+00> : vector<512xf32>
    %24 = vector.multi_reduction <add>, %23, %cst_18 [1] : vector<512x16xf32> to vector<512xf32>
    %25 = vector.shape_cast %24 : vector<512xf32> to vector<512x1xf32>
    %26 = arith.negf %25 : vector<512x1xf32>
    %27 = math.exp %26 : vector<512x1xf32>
    %cst_19 = arith.constant 1.000000e+00 : f32
    %28 = vector.broadcast %cst_19 : f32 to vector<512x1xf32>
    %29 = arith.addf %28, %27 : vector<512x1xf32>
    %30 = arith.divf %28, %29 : vector<512x1xf32>
    %c0_20 = arith.constant 0 : index
    %c0_21 = arith.constant 0 : index
    %31 = vector.load %arg7[%c0_20, %c0_21] : memref<1x32xf32, #tpu.memory_space<vmem>>, vector<1x32xf32>
    %32 = vector.broadcast %30 : vector<512x1xf32> to vector<512x32xf32>
    %33 = vector.broadcast %31 : vector<1x32xf32> to vector<512x32xf32>
    %34 = arith.mulf %32, %33 : vector<512x32xf32>
    %35 = arith.negf %34 : vector<512x32xf32>
    %36 = math.exp %35 : vector<512x32xf32>
    %cst_22 = arith.constant 1.000000e+00 : f32
    %37 = vector.broadcast %cst_22 : f32 to vector<512x32xf32>
    %38 = arith.addf %37, %36 : vector<512x32xf32>
    %39 = arith.divf %37, %38 : vector<512x32xf32>
    %c0_23 = arith.constant 0 : index
    %c0_24 = arith.constant 0 : index
    %40 = vector.load %arg8[%c0_23, %c0_24] : memref<512x32xf32, #tpu.memory_space<vmem>>, vector<512x32xf32>
    tpu.vector_store %arg8[%c0_23, %c0_24], %39 {strides = array<i32>} : memref<512x32xf32, #tpu.memory_space<vmem>>, vector<512x32xf32>,
    return
  }
  func.func @transform_0(%arg0: i32) -> (i32, i32) {
    %c0_i32 = arith.constant 0 : i32
    %c0_i32_0 = arith.constant 0 : i32
    return %arg0, %c0_i32 : i32, i32
  }
  func.func @transform_1(%arg0: i32) -> (i32, i32) {
    %c0_i32 = arith.constant 0 : i32
    %c0_i32_0 = arith.constant 0 : i32
    %c0_i32_1 = arith.constant 0 : i32
    return %c0_i32, %c0_i32_0 : i32, i32
  }
  func.func @transform_2(%arg0: i32) -> (i32, i32) {
    %c0_i32 = arith.constant 0 : i32
    %c0_i32_0 = arith.constant 0 : i32
    %c0_i32_1 = arith.constant 0 : i32
    return %c0_i32, %c0_i32_0 : i32, i32
  }
  func.func @transform_3(%arg0: i32) -> (i32, i32) {
    %c0_i32 = arith.constant 0 : i32
    %c0_i32_0 = arith.constant 0 : i32
    %c0_i32_1 = arith.constant 0 : i32
    return %c0_i32, %c0_i32_0 : i32, i32
  }
  func.func @transform_4(%arg0: i32) -> (i32, i32) {
    %c0_i32 = arith.constant 0 : i32
    %c0_i32_0 = arith.constant 0 : i32
    %c0_i32_1 = arith.constant 0 : i32
    return %c0_i32, %c0_i32_0 : i32, i32
  }
  func.func @transform_5(%arg0: i32) -> (i32, i32) {
    %c0_i32 = arith.constant 0 : i32
    %c0_i32_0 = arith.constant 0 : i32
    %c0_i32_1 = arith.constant 0 : i32
    return %c0_i32, %c0_i32_0 : i32, i32
  }
  func.func @transform_6(%arg0: i32) -> (i32, i32) {
    %c0_i32 = arith.constant 0 : i32
    %c0_i32_0 = arith.constant 0 : i32
    %c0_i32_1 = arith.constant 0 : i32
    return %c0_i32, %c0_i32_0 : i32, i32
  }
  func.func @transform_7(%arg0: i32) -> (i32, i32) {
    %c0_i32 = arith.constant 0 : i32
    %c0_i32_0 = arith.constant 0 : i32
    return %arg0, %c0_i32 : i32, i32
  }
}

</mosaic_0001>

<bundles_post_ra>
// kernel: deep_svdd_forward.1
= control target key start
LH: loop header
LB: loop body
LE: loop exit
PB: predicated region body
PF: predicated region fallthrough
CT: control target
= control target key end

     0   :  { %s4865_s24 = smov 0   ;;  %s5451_s0 = inlined_call_operand.vmem [shape: f32[1024,100], index: 0, kind: input, shape index: {}]   ;;  %s5452_s1 = inlined_call_operand.vmem [shape: bf16[100,128], index: 1, kind: input, shape index: {}]   ;;  %s5453_s2 = inlined_call_operand.vmem [shape: bf16[128,64], index: 2, kind: input, shape index: {}]   ;;  %s5454_s3 = inlined_call_operand.vmem [shape: bf16[64,32], index: 3, kind: input, shape index: {}]   ;;  %s5455_s4 = inlined_call_operand.vmem [shape: bf16[32,16], index: 4, kind: input, shape index: {}]   ;;  %s5456_s5 = inlined_call_operand.vmem [shape: f32[1,16], index: 5, kind: input, shape index: {}]   ;;  %s5457_s6 = inlined_call_operand.vmem [shape: f32[1,32], index: 6, kind: input, shape index: {}]   ;;  %s5458_s7 = inlined_call_operand.vmem [shape: f32[1024,32], index: 7, kind: output, shape index: {}]  }
   0x1 LB: > { %s3569_s25 = sadd.s32 4294967295, %s4823_s24   ;;  %p3573_p0 = scmp.ge.s32.totalorder %s4823_s24, 1  ;;  %s4823_s24 = sphi %s4865_s24, %s17_s24  }
   0x2   : > { %p238_p1 = scmp.lt.s32.totalorder %s4823_s24, 3 }
   0x4   : > { %p239_p2 = pnand %p3573_p0, %p238_p1 }
   0x5   : > { %v4283_v0 = vld [vmem:[%s5452_s1] sm:$0xff] (!%p239_p2)   ;;  %v4284_v1 = vld [vmem:[%s5452_s1 + $0x8] sm:$0xff] (!%p239_p2)   ;;  %s3574_s30 = sshll.u32 (!%p239_p2), %s3569_s25, 6  ;;  %v4285_v2 = vld [vmem:[%s5452_s1 + $0x10] sm:$0xff] (!%p239_p2)   ;;  %vm431_vm0 = vcmask (!%p239_p2), 818176   ;;  %vm528_vm1 = vcmask (!%p239_p2), 1041408  }
   0x6   : > { %242 = sbr.rel (%p239_p2) target bundleno = 1352 (0x548), region = 48  ;;  %3976 = vmatprep.subr.bf16.mxu0 (!%p239_p2), %v4283_v0  ;;  %p271_p3 = scmp.lt.s32.totalorder (!%p239_p2), %s3574_s30, 127  ;;  %v4286_v3 = vld [vmem:[%s5452_s1 + $0x18] sm:$0xff] (!%p239_p2)   ;;  %v4287_v7 = vld [vmem:[%s5452_s1 + $0x20] sm:$0xff] (!%p239_p2)   ;;  %v4288_v8 = vld [vmem:[%s5452_s1 + $0x28] sm:$0xff] (!%p239_p2)   ;;  %vm1398_vm2 = vcmask (!%p239_p2), 523264  }
   0x7   : > { %3977 = vmatpush3.bf16.msra.mxu0 (!%p239_p2), %v4283_v0  ;;  %v4289_v9 = vld [vmem:[%s5452_s1 + $0x30] ss:$0 sps:$4 sm:$0x33] (!%p239_p2)   ;;  %v4290_v19 = vld [vmem:[%s5453_s2] sm:$0xff] (!%p239_p2)   ;;  %v4291_v20 = vld [vmem:[%s5453_s2 + $0x8] sm:$0xff] (!%p239_p2)   ;;  %vm1896_vm3 = vcmask (!%p239_p2), 261120  }
   0x8   : > { %3978 = vmatprep.subr.bf16.mxu0 (!%p239_p2), %v4284_v1  ;;  %v530_v12 = vsel (!%p239_p2), %vm528_vm1, %v4289_v9, 0  ;;  %4054 = vmatprep.subr.bf16.mxu1 (!%p239_p2), %v4290_v19  ;;  %v4292_v23 = vld [vmem:[%s5453_s2 + $0x10] sm:$0xff] (!%p239_p2)   ;;  %v4293_v26 = vld [vmem:[%s5453_s2 + $0x18] sm:$0xff] (!%p239_p2)   ;;  %v4294_v31 = vld [vmem:[%s5453_s2 + $0x20] sm:$0xff] (!%p239_p2)   ;;  %vm2417_vm4 = vcmask (!%p239_p2), 130048  }
   0x9   : > { %4055 = vmatpush3.bf16.msra.mxu1 (!%p239_p2), %v4290_v19  ;;  %v4295_v34 = vld [vmem:[%s5453_s2 + $0x28] sm:$0xff] (!%p239_p2)  }
   0xa   : > { %4056 = vmatprep.subr.bf16.mxu1 (!%p239_p2), %v4291_v20 }
   0xb   : > { %3979 = vmatpush3.bf16.msra.mxu0 (!%p239_p2), %v4284_v1 }
   0xc   : > { %3980 = vmatprep.subr.bf16.mxu0 (!%p239_p2), %v4285_v2 }
   0xd   : > { %s5460_s30 = smov (!%p271_p3, %s3574_s30), 127  ;;  %4057 = vmatpush3.bf16.msra.mxu1 %v4291_v20 }
   0xe   : > { %s3575_s10 = sshll.u32 %s5460_s30, 3  ;;  %4058 = vmatprep.subr.bf16.mxu1 %v4292_v23 }
   0xf   : > { %s4890_s13 = scalar_lea.vmem %s5451_s0, %s3575_s10  ;;  %3981 = vmatpush3.bf16.msra.mxu0 %v4285_v2  ;;  %s5260_s17 = scalar_lea.vmem %s5458_s7, %s3575_s10 }
  0x10   : > { %v283_v4 = vld [vmem:[%s4890_s13] sm:$0xff]  ;;  %v284_v5 = vld [vmem:[%s4890_s13 + $0x8] sm:$0xff]  ;;  %3982 = vmatprep.subr.bf16.mxu0 %v4286_v3  ;;  %v285_v10 = vld [vmem:[%s4890_s13 + $0x10] sm:$0xff] }
  0x11   : > { %v347_v6 = vpack.c.bf16 %v284_v5, %v283_v4  ;;  %v286_v11 = vld [vmem:[%s4890_s13 + $0x18] sm:$0xff]  ;;  %v287_v13 = vld [vmem:[%s4890_s13 + $0x20] sm:$0xff]  ;;  %v288_v14 = vld [vmem:[%s4890_s13 + $0x28] sm:$0xff]  ;;  %4059 = vmatpush3.bf16.msra.mxu1 %v4292_v23 }
  0x12   : > { %v348_v15 = vpack.c.bf16 %v286_v11, %v285_v10  ;;  %v349_v16 = vpack.c.bf16 %v288_v14, %v287_v13  ;;  %v289_v17 = vld [vmem:[%s4890_s13 + $0x30] sm:$0xff]  ;;  %v290_v18 = vld [vmem:[%s4890_s13 + $0x38] sm:$0xff]  ;;  %v291_v21 = vld [vmem:[%s4890_s13 + $0x40] sm:$0xff]  ;;  %4060 = vmatprep.subr.bf16.mxu1 %v4293_v26 }
  0x13   : > { %3990 = vmatprep.mubr.msk.bf16.mxu0 %vm431_vm0, %v347_v6  ;;  %3983 = vmatpush3.bf16.msra.mxu0 %v4286_v3  ;;  %v292_v22 = vld [vmem:[%s4890_s13 + $0x48] sm:$0xff]  ;;  %v350_v24 = vpack.c.bf16 %v290_v18, %v289_v17  ;;  %v293_v27 = vld [vmem:[%s4890_s13 + $0x50] sm:$0xff]  ;;  %v294_v28 = vld [vmem:[%s4890_s13 + $0x58] sm:$0xff] }
  0x14   : > { %3984 = vmatprep.subr.bf16.mxu0 %v4287_v7  ;;  %v351_v25 = vpack.c.bf16 %v292_v22, %v291_v21  ;;  %v295_v29 = vld [vmem:[%s4890_s13 + $0x60] sm:$0xff]  ;;  %v296_v30 = vld [vmem:[%s4890_s13 + $0x68] sm:$0xff]  ;;  %v352_v32 = vpack.c.bf16 %v294_v28, %v293_v27  ;;  %v297_v35 = vld [vmem:[%s4890_s13 + $0x70] sm:$0xff] }
  0x15   : > { %v353_v33 = vpack.c.bf16 %v296_v30, %v295_v29  ;;  %4061 = vmatpush3.bf16.msra.mxu1 %v4293_v26  ;;  %v298_v36 = vld [vmem:[%s4890_s13 + $0x78] sm:$0xff]  ;;  %v299_v37 = vld [vmem:[%s4890_s13 + $0x80] sm:$0xff]  ;;  %v300_v38 = vld [vmem:[%s4890_s13 + $0x88] sm:$0xff] }
  0x16   : > { %4062 = vmatprep.subr.bf16.mxu1 %v4294_v31  ;;  %v354_v39 = vpack.c.bf16 %v298_v36, %v297_v35  ;;  %v355_v40 = vpack.c.bf16 %v300_v38, %v299_v37  ;;  %v301_v41 = vld [vmem:[%s4890_s13 + $0x90] sm:$0xff]  ;;  %v302_v42 = vld [vmem:[%s4890_s13 + $0x98] sm:$0xff]  ;;  %v303_v43 = vld [vmem:[%s4890_s13 + $0xa0] sm:$0xff] }
  0x17   : > { %3985 = vmatpush3.bf16.msra.mxu0 %v4287_v7  ;;  %v304_v44 = vld [vmem:[%s4890_s13 + $0xa8] sm:$0xff]  ;;  %v356_v45 = vpack.c.bf16 %v302_v42, %v301_v41  ;;  %v305_v47 = vld [vmem:[%s4890_s13 + $0xb0] sm:$0xff]  ;;  %v306_v48 = vld [vmem:[%s4890_s13 + $0xb8] sm:$0xff] }
  0x18   : > { %3986 = vmatprep.subr.bf16.mxu0 %v4288_v8  ;;  %v357_v46 = vpack.c.bf16 %v304_v44, %v303_v43  ;;  %v307_v49 = vld [vmem:[%s4890_s13 + $0xc0] sm:$0xff]  ;;  %v308_v50 = vld [vmem:[%s4890_s13 + $0xc8] sm:$0xff]  ;;  %v358_v51 = vpack.c.bf16 %v306_v48, %v305_v47  ;;  %v309_v53 = vld [vmem:[%s4890_s13 + $0xd0] sm:$0xff] }
  0x19   : > { %4063 = vmatpush3.bf16.msra.mxu1 %v4294_v31  ;;  %v359_v52 = vpack.c.bf16 %v308_v50, %v307_v49  ;;  %v310_v54 = vld [vmem:[%s4890_s13 + $0xd8] sm:$0xff]  ;;  %v311_v55 = vld [vmem:[%s4890_s13 + $0xe0] sm:$0xff]  ;;  %v312_v56 = vld [vmem:[%s4890_s13 + $0xe8] sm:$0xff] }
  0x1a   : > { %4064 = vmatprep.subr.bf16.mxu1 %v4295_v34  ;;  %v360_v57 = vpack.c.bf16 %v310_v54, %v309_v53  ;;  %v361_v58 = vpack.c.bf16 %v312_v56, %v311_v55  ;;  %v313_v59 = vld [vmem:[%s4890_s13 + $0xf0] sm:$0xff]  ;;  %v314_v60 = vld [vmem:[%s4890_s13 + $0xf8] sm:$0xff]  ;;  %v315_v61 = vld [vmem:[%s4890_s13 + $0x100] sm:$0xff] }
  0x1b   : > { %3987 = vmatpush3.bf16.msra.mxu0 %v4288_v8  ;;  %v316_v62 = vld [vmem:[%s4890_s13 + $0x108] sm:$0xff]  ;;  %v362_v63 = vpack.c.bf16 %v314_v60, %v313_v59  ;;  %v317_v1 = vld [vmem:[%s4890_s13 + $0x110] sm:$0xff]  ;;  %v318_v2 = vld [vmem:[%s4890_s13 + $0x118] sm:$0xff] }
  0x1c   : > { %4274 = vmatprep.subr.msk.bf16.mxu0 %vm528_vm1, %v4289_v9  ;;  %v363_v0 = vpack.c.bf16 %v316_v62, %v315_v61  ;;  %v319_v3 = vld [vmem:[%s4890_s13 + $0x120] sm:$0xff]  ;;  %v320_v4 = vld [vmem:[%s4890_s13 + $0x128] sm:$0xff]  ;;  %v364_v5 = vpack.c.bf16 %v318_v2, %v317_v1  ;;  %v321_v7 = vld [vmem:[%s4890_s13 + $0x130] sm:$0xff] }
  0x1d   : > { %4065 = vmatpush3.bf16.msra.mxu1 %v4295_v34  ;;  %v365_v6 = vpack.c.bf16 %v320_v4, %v319_v3  ;;  %v322_v8 = vld [vmem:[%s4890_s13 + $0x138] sm:$0xff]  ;;  %v323_v9 = vld [vmem:[%s4890_s13 + $0x140] sm:$0xff]  ;;  %v324_v10 = vld [vmem:[%s4890_s13 + $0x148] sm:$0xff] }
  0x1e   : > { %v366_v11 = vpack.c.bf16 %v322_v8, %v321_v7  ;;  %v325_v13 = vld [vmem:[%s4890_s13 + $0x150] sm:$0xff]  ;;  %v326_v14 = vld [vmem:[%s4890_s13 + $0x158] sm:$0xff]  ;;  %v331_v21 = vld [vmem:[%s4890_s13 + $0x180] sm:$0xff] }
  0x1f   : > { %3989 = vmatpush3.bf16.msra.mxu0 %v530_v12  ;;  %v367_v12 = vpack.c.bf16 %v324_v10, %v323_v9  ;;  %v368_v17 = vpack.c.bf16 %v326_v14, %v325_v13  ;;  %v329_v19 = vld [vmem:[%s4890_s13 + $0x170] sm:$0xff]  ;;  %v330_v20 = vld [vmem:[%s4890_s13 + $0x178] sm:$0xff]  ;;  %v332_v22 = vld [vmem:[%s4890_s13 + $0x188] sm:$0xff] }
  0x20   : > { %v4296_v23 = vld [vmem:[%s5453_s2 + $0x30] sm:$0xff]   ;;  %v4297_v26 = vld [vmem:[%s5453_s2 + $0x38] sm:$0xff]   ;;  %v335_v29 = vld [vmem:[%s4890_s13 + $0x1a0] sm:$0xff] }
  0x21   : > { %4066 = vmatprep.subr.bf16.mxu1 %v4296_v23  ;;  %v333_v27 = vld [vmem:[%s4890_s13 + $0x190] sm:$0xff]  ;;  %v334_v28 = vld [vmem:[%s4890_s13 + $0x198] sm:$0xff]  ;;  %v336_v30 = vld [vmem:[%s4890_s13 + $0x1a8] sm:$0xff] }
  0x22   : > { %3991 = vmatmul.mubr.msk.bf16.vlgmr.msra.gmra.mrb[0].mxu0 %vm431_vm0, %v348_v15  ;;  %v327_v15 = vld [vmem:[%s4890_s13 + $0x160] sm:$0xff]  ;;  %4067 = vmatpush3.bf16.msra.mxu1 %v4296_v23  ;;  %v372_v31 = vpack.c.bf16 %v334_v28, %v333_v27  ;;  %v338_v34 = vld [vmem:[%s4890_s13 + $0x1b8] sm:$0xff]  ;;  %v340_v36 = vld [vmem:[%s4890_s13 + $0x1c8] sm:$0xff] }
  0x23   : > { %3994 = vmatprep.mubr.msk.bf16.mxu0 %vm431_vm0, %v349_v16  ;;  %v328_v16 = vld [vmem:[%s4890_s13 + $0x168] sm:$0xff]  ;;  %4068 = vmatprep.subr.bf16.mxu1 %v4297_v26  ;;  %v339_v35 = vld [vmem:[%s4890_s13 + $0x1c0] sm:$0xff]  ;;  %v4301_v60 = vld [vmem:[%s5454_s3 + $0x18] sm:$0xff]  }
  0x24   : > { %v369_v18 = vpack.c.bf16 %v328_v16, %v327_v15  ;;  %v375_v38 = vpack.c.bf16 %v340_v36, %v339_v35  ;;  %v343_v41 = vld [vmem:[%s4890_s13 + $0x1e0] sm:$0xff]  ;;  %v344_v42 = vld [vmem:[%s4890_s13 + $0x1e8] sm:$0xff] }
  0x25   : > { %v377_v44 = vpack.c.bf16 %v344_v42, %v343_v41  ;;  %v4298_v48 = vld [vmem:[%s5454_s3] sm:$0xff]  }
  0x26   : > { %4069 = vmatpush3.bf16.msra.mxu1 %v4297_v26  ;;  %4134 = vmatprep.subr.bf16.mxu0 %v4298_v48 }
  0x27   : > { %4135 = vmatpush3.bf16.msra.mxu0 %v4298_v48 }
  0x2a   : > { %3995 = vmatmul.mubr.msk.bf16.gmra.mrb[4].mxu0 %vm431_vm0, %v350_v24  ;;  %v370_v24 = vpack.c.bf16 %v330_v20, %v329_v19 }
  0x2b   : > { %3998 = vmatprep.mubr.msk.bf16.mxu0 %vm431_vm0, %v351_v25  ;;  %v371_v25 = vpack.c.bf16 %v332_v22, %v331_v21 }
  0x32   : > { %3999 = vmatmul.mubr.msk.bf16.gmra.mrb[8].mxu0 %vm431_vm0, %v352_v32  ;;  %v373_v32 = vpack.c.bf16 %v336_v30, %v335_v29 }
  0x33   : > { %4002 = vmatprep.mubr.msk.bf16.mxu0 %vm431_vm0, %v353_v33  ;;  %v337_v33 = vld [vmem:[%s4890_s13 + $0x1b0] sm:$0xff] }
  0x34   : > { %v374_v37 = vpack.c.bf16 %v338_v34, %v337_v33 }
  0x3a   : > { %4003 = vmatmul.mubr.msk.bf16.gmra.mrb[12].mxu0 %vm431_vm0, %v354_v39  ;;  %v341_v39 = vld [vmem:[%s4890_s13 + $0x1d0] sm:$0xff] }
  0x3b   : > { %4006 = vmatprep.mubr.msk.bf16.mxu0 %vm431_vm0, %v355_v40  ;;  %v342_v40 = vld [vmem:[%s4890_s13 + $0x1d8] sm:$0xff] }
  0x3c   : > { %v376_v43 = vpack.c.bf16 %v342_v40, %v341_v39 }
  0x42   : > { %4007 = vmatmul.mubr.msk.bf16.gmra.mrb[16].mxu0 %vm431_vm0, %v356_v45  ;;  %v345_v45 = vld [vmem:[%s4890_s13 + $0x1f0] sm:$0xff] }
  0x43   : > { %4010 = vmatprep.mubr.msk.bf16.mxu0 %vm431_vm0, %v357_v46  ;;  %v346_v46 = vld [vmem:[%s4890_s13 + $0x1f8] sm:$0xff] }
  0x44   : > { %v378_v47 = vpack.c.bf16 %v346_v46, %v345_v45 }
  0x4a   : > { %4011 = vmatmul.mubr.msk.bf16.gmra.mrb[20].mxu0 %vm431_vm0, %v358_v51  ;;  %v4299_v51 = vld [vmem:[%s5454_s3 + $0x8] sm:$0xff]  }
  0x4b   : > { %4014 = vmatprep.mubr.msk.bf16.mxu0 %vm431_vm0, %v359_v52  ;;  %v4300_v52 = vld [vmem:[%s5454_s3 + $0x10] sm:$0xff]   ;;  %4136 = vmatprep.subr.bf16.mxu0 %v4299_v51 }
  0x4c   : > { %4137 = vmatpush3.bf16.msra.mxu0 %v4299_v51 }
  0x4d   : > { %4138 = vmatprep.subr.bf16.mxu0 %v4300_v52 }
  0x50   : > { %4139 = vmatpush3.bf16.msra.mxu0 %v4300_v52 }
  0x51   : > { %4140 = vmatprep.subr.bf16.mxu0 %v4301_v60 }
  0x52   : > { %4015 = vmatmul.mubr.msk.bf16.gmra.mrb[24].mxu0 %vm431_vm0, %v360_v57 }
  0x53   : > { %4018 = vmatprep.mubr.msk.bf16.mxu0 %vm431_vm0, %v361_v58 }
  0x54   : > { %4141 = vmatpush3.bf16.msra.mxu0 %v4301_v60 }
  0x5a   : > { %4019 = vmatmul.mubr.msk.bf16.gmra.mrb[28].mxu0 %vm431_vm0, %v362_v63 }
  0x5b   : > { %4022 = vmatprep.mubr.msk.bf16.mxu0 %vm431_vm0, %v363_v0 }
  0x62   : > { %4023 = vmatmul.mubr.msk.bf16.gmra.mrb[32].mxu0 %vm431_vm0, %v364_v5 }
  0x63   : > { %4026 = vmatprep.mubr.msk.bf16.mxu0 %vm431_vm0, %v365_v6 }
  0x6a   : > { %4027 = vmatmul.mubr.msk.bf16.gmra.mrb[36].mxu0 %vm431_vm0, %v366_v11 }
  0x6b   : > { %4030 = vmatprep.mubr.msk.bf16.mxu0 %vm431_vm0, %v367_v12 }
  0x72   : > { %4031 = vmatmul.mubr.msk.bf16.gmra.mrb[40].mxu0 %vm431_vm0, %v368_v17 }
  0x73   : > { %4034 = vmatprep.mubr.msk.bf16.mxu0 %vm431_vm0, %v369_v18 }
  0x7a   : > { %4035 = vmatmul.mubr.msk.bf16.gmra.mrb[44].mxu0 %vm431_vm0, %v370_v24 }
  0x7b   : > { %4038 = vmatprep.mubr.msk.bf16.mxu0 %vm431_vm0, %v371_v25 }
  0x82   : > { %4039 = vmatmul.mubr.msk.bf16.gmra.mrb[48].mxu0 %vm431_vm0, %v372_v31 }
  0x83   : > { %4042 = vmatprep.mubr.msk.bf16.mxu0 %vm431_vm0, %v373_v32 }
  0x8a   : > { %4043 = vmatmul.mubr.msk.bf16.gmra.mrb[52].mxu0 %vm431_vm0, %v374_v37 }
  0x8b   : > { %4046 = vmatprep.mubr.msk.bf16.mxu0 %vm431_vm0, %v375_v38 }
  0x92   : > { %4047 = vmatmul.mubr.msk.bf16.gmra.mrb[56].mxu0 %vm431_vm0, %v376_v43 }
  0x93   : > { %4050 = vmatprep.mubr.msk.bf16.mxu0 %vm431_vm0, %v377_v44 }
  0x9a   : > { %4051 = vmatmul.mubr.msk.bf16.gmra.mrb[60].mxu0 %vm431_vm0, %v378_v47 }
  0xf5   : > { %v3992_v49 = vpop.f32.mrb[0].mxu0 }
  0xf6   : > { %v566_v50 = vpop.f32.mrb[1].mxu0  ;;  %v823_v54 = vmax.f32 %v3992_v49, 0.0 }
  0xf7   : > { %v3993_v53 = vpop.f32.mrb[2].mxu0  ;;  %v821_v57 = vmax.f32 %v566_v50, 0.0 }
  0xf8   : > { %v824_v55 = vmax.f32 %v3993_v53, 0.0  ;;  %v569_v56 = vpop.f32.mrb[3].mxu0 }
  0xf9   : > { %v822_v58 = vmax.f32 %v569_v56, 0.0 }
  0xfa   : > { %v886_v59 = vpack.c.bf16 %v824_v55, %v823_v54 }
  0xfb   : > { %v885_v61 = vpack.c.bf16 %v822_v58, %v821_v57 }
  0xfd   : > { %v3996_v62 = vpop.f32.mrb[4].mxu0  ;;  %4070 = vmatprep.mubr.bf16.mxu1 %v885_v61 }
  0xfe   : > { %v582_v63 = vpop.f32.mrb[5].mxu0  ;;  %4071 = vmatmul.mubr.bf16.vlgmr.msra.gmra.mrb[0].mxu1 %v886_v59  ;;  %v827_v1 = vmax.f32 %v3996_v62, 0.0 }
  0xff   : > { %v3997_v0 = vpop.f32.mrb[6].mxu0  ;;  %v825_v4 = vmax.f32 %v582_v63, 0.0 }
 0x100   : > { %v828_v2 = vmax.f32 %v3997_v0, 0.0  ;;  %v585_v3 = vpop.f32.mrb[7].mxu0 }
 0x101   : > { %v826_v5 = vmax.f32 %v585_v3, 0.0 }
 0x102   : > { %v888_v6 = vpack.c.bf16 %v828_v2, %v827_v1 }
 0x103   : > { %v887_v7 = vpack.c.bf16 %v826_v5, %v825_v4 }
 0x105   : > { %v4000_v8 = vpop.f32.mrb[8].mxu0  ;;  %4074 = vmatprep.mubr.bf16.mxu1 %v887_v7 }
 0x106   : > { %v598_v9 = vpop.f32.mrb[9].mxu0  ;;  %4075 = vmatmul.mubr.bf16.gmra.mrb[4].mxu1 %v888_v6  ;;  %v831_v11 = vmax.f32 %v4000_v8, 0.0 }
 0x107   : > { %v4001_v10 = vpop.f32.mrb[10].mxu0  ;;  %v829_v14 = vmax.f32 %v598_v9, 0.0 }
 0x108   : > { %v832_v12 = vmax.f32 %v4001_v10, 0.0  ;;  %v601_v13 = vpop.f32.mrb[11].mxu0 }
 0x109   : > { %v830_v15 = vmax.f32 %v601_v13, 0.0 }
 0x10a   : > { %v890_v16 = vpack.c.bf16 %v832_v12, %v831_v11 }
 0x10b   : > { %v889_v17 = vpack.c.bf16 %v830_v15, %v829_v14 }
 0x10d   : > { %v4004_v18 = vpop.f32.mrb[12].mxu0  ;;  %4078 = vmatprep.mubr.bf16.mxu1 %v889_v17 }
 0x10e   : > { %v614_v19 = vpop.f32.mrb[13].mxu0  ;;  %4079 = vmatmul.mubr.bf16.gmra.mrb[8].mxu1 %v890_v16  ;;  %v835_v21 = vmax.f32 %v4004_v18, 0.0 }
 0x10f   : > { %v4005_v20 = vpop.f32.mrb[14].mxu0  ;;  %v833_v24 = vmax.f32 %v614_v19, 0.0 }
 0x110   : > { %v836_v22 = vmax.f32 %v4005_v20, 0.0  ;;  %v617_v23 = vpop.f32.mrb[15].mxu0 }
 0x111   : > { %v834_v25 = vmax.f32 %v617_v23, 0.0 }
 0x112   : > { %v892_v26 = vpack.c.bf16 %v836_v22, %v835_v21 }
 0x113   : > { %v891_v27 = vpack.c.bf16 %v834_v25, %v833_v24 }
 0x115   : > { %v4008_v28 = vpop.f32.mrb[16].mxu0  ;;  %4082 = vmatprep.mubr.bf16.mxu1 %v891_v27 }
 0x116   : > { %v630_v29 = vpop.f32.mrb[17].mxu0  ;;  %4083 = vmatmul.mubr.bf16.gmra.mrb[12].mxu1 %v892_v26  ;;  %v839_v31 = vmax.f32 %v4008_v28, 0.0 }
 0x117   : > { %v4009_v30 = vpop.f32.mrb[18].mxu0  ;;  %v837_v34 = vmax.f32 %v630_v29, 0.0 }
 0x118   : > { %v840_v32 = vmax.f32 %v4009_v30, 0.0  ;;  %v633_v33 = vpop.f32.mrb[19].mxu0 }
 0x119   : > { %v838_v35 = vmax.f32 %v633_v33, 0.0 }
 0x11a   : > { %v894_v36 = vpack.c.bf16 %v840_v32, %v839_v31 }
 0x11b   : > { %v893_v37 = vpack.c.bf16 %v838_v35, %v837_v34 }
 0x11d   : > { %v4012_v38 = vpop.f32.mrb[20].mxu0  ;;  %4086 = vmatprep.mubr.bf16.mxu1 %v893_v37 }
 0x11e   : > { %v646_v39 = vpop.f32.mrb[21].mxu0  ;;  %4087 = vmatmul.mubr.bf16.gmra.mrb[16].mxu1 %v894_v36  ;;  %v843_v41 = vmax.f32 %v4012_v38, 0.0 }
 0x11f   : > { %v4013_v40 = vpop.f32.mrb[22].mxu0  ;;  %v841_v44 = vmax.f32 %v646_v39, 0.0 }
 0x120   : > { %v844_v42 = vmax.f32 %v4013_v40, 0.0  ;;  %v649_v43 = vpop.f32.mrb[23].mxu0 }
 0x121   : > { %v842_v45 = vmax.f32 %v649_v43, 0.0 }
 0x122   : > { %v896_v46 = vpack.c.bf16 %v844_v42, %v843_v41 }
 0x123   : > { %v895_v47 = vpack.c.bf16 %v842_v45, %v841_v44 }
 0x125   : > { %v4016_v48 = vpop.f32.mrb[24].mxu0  ;;  %4090 = vmatprep.mubr.bf16.mxu1 %v895_v47 }
 0x126   : > { %v662_v49 = vpop.f32.mrb[25].mxu0  ;;  %4091 = vmatmul.mubr.bf16.gmra.mrb[20].mxu1 %v896_v46  ;;  %v847_v51 = vmax.f32 %v4016_v48, 0.0 }
 0x127   : > { %v4017_v50 = vpop.f32.mrb[26].mxu0  ;;  %v845_v54 = vmax.f32 %v662_v49, 0.0 }
 0x128   : > { %v848_v52 = vmax.f32 %v4017_v50, 0.0  ;;  %v665_v53 = vpop.f32.mrb[27].mxu0 }
 0x129   : > { %v846_v55 = vmax.f32 %v665_v53, 0.0 }
 0x12a   : > { %v898_v56 = vpack.c.bf16 %v848_v52, %v847_v51 }
 0x12b   : > { %v897_v57 = vpack.c.bf16 %v846_v55, %v845_v54 }
 0x12d   : > { %v4020_v58 = vpop.f32.mrb[28].mxu0  ;;  %4094 = vmatprep.mubr.bf16.mxu1 %v897_v57 }
 0x12e   : > { %v678_v59 = vpop.f32.mrb[29].mxu0  ;;  %4095 = vmatmul.mubr.bf16.gmra.mrb[24].mxu1 %v898_v56  ;;  %v851_v61 = vmax.f32 %v4020_v58, 0.0 }
 0x12f   : > { %v4021_v60 = vpop.f32.mrb[30].mxu0  ;;  %v849_v0 = vmax.f32 %v678_v59, 0.0 }
 0x130   : > { %v852_v62 = vmax.f32 %v4021_v60, 0.0  ;;  %v681_v63 = vpop.f32.mrb[31].mxu0 }
 0x131   : > { %v850_v1 = vmax.f32 %v681_v63, 0.0 }
 0x132   : > { %v900_v2 = vpack.c.bf16 %v852_v62, %v851_v61 }
 0x133   : > { %v899_v3 = vpack.c.bf16 %v850_v1, %v849_v0 }
 0x135   : > { %v4024_v4 = vpop.f32.mrb[32].mxu0  ;;  %4098 = vmatprep.mubr.bf16.mxu1 %v899_v3 }
 0x136   : > { %v694_v5 = vpop.f32.mrb[33].mxu0  ;;  %4099 = vmatmul.mubr.bf16.gmra.mrb[28].mxu1 %v900_v2  ;;  %v855_v7 = vmax.f32 %v4024_v4, 0.0 }
 0x137   : > { %v4025_v6 = vpop.f32.mrb[34].mxu0  ;;  %v853_v10 = vmax.f32 %v694_v5, 0.0 }
 0x138   : > { %v856_v8 = vmax.f32 %v4025_v6, 0.0  ;;  %v697_v9 = vpop.f32.mrb[35].mxu0 }
 0x139   : > { %v854_v11 = vmax.f32 %v697_v9, 0.0 }
 0x13a   : > { %v902_v12 = vpack.c.bf16 %v856_v8, %v855_v7 }
 0x13b   : > { %v901_v13 = vpack.c.bf16 %v854_v11, %v853_v10 }
 0x13d   : > { %v4028_v14 = vpop.f32.mrb[36].mxu0  ;;  %4102 = vmatprep.mubr.bf16.mxu1 %v901_v13 }
 0x13e   : > { %v710_v15 = vpop.f32.mrb[37].mxu0  ;;  %4103 = vmatmul.mubr.bf16.gmra.mrb[32].mxu1 %v902_v12  ;;  %v859_v17 = vmax.f32 %v4028_v14, 0.0 }
 0x13f   : > { %v4029_v16 = vpop.f32.mrb[38].mxu0  ;;  %v857_v20 = vmax.f32 %v710_v15, 0.0 }
 0x140   : > { %v860_v18 = vmax.f32 %v4029_v16, 0.0  ;;  %v713_v19 = vpop.f32.mrb[39].mxu0 }
 0x141   : > { %v858_v21 = vmax.f32 %v713_v19, 0.0 }
 0x142   : > { %v904_v22 = vpack.c.bf16 %v860_v18, %v859_v17 }
 0x143   : > { %v903_v23 = vpack.c.bf16 %v858_v21, %v857_v20  ;;  %v4302_v20 = vld [vmem:[%s5455_s4] sm:$0xff]  }
 0x144   : > { %4206 = vmatprep.subr.bf16.mxu1 %v4302_v20 }
 0x145   : > { %v4032_v24 = vpop.f32.mrb[40].mxu0  ;;  %4106 = vmatprep.mubr.bf16.mxu1 %v903_v23  ;;  %4207 = vmatpush3.bf16.msra.mxu1 %v4302_v20  ;;  %v4303_v23 = vld [vmem:[%s5455_s4 + $0x8] sm:$0xff]  }
 0x146   : > { %v726_v25 = vpop.f32.mrb[41].mxu0  ;;  %4107 = vmatmul.mubr.bf16.gmra.mrb[36].mxu1 %v904_v22  ;;  %v863_v27 = vmax.f32 %v4032_v24, 0.0  ;;  %4208 = vmatprep.subr.bf16.mxu1 %v4303_v23 }
 0x147   : > { %v4033_v26 = vpop.f32.mrb[42].mxu0  ;;  %v861_v30 = vmax.f32 %v726_v25, 0.0 }
 0x148   : > { %v864_v28 = vmax.f32 %v4033_v26, 0.0  ;;  %v729_v29 = vpop.f32.mrb[43].mxu0 }
 0x149   : > { %v862_v31 = vmax.f32 %v729_v29, 0.0  ;;  %4209 = vmatpush3.bf16.msra.mxu1 %v4303_v23 }
 0x14a   : > { %v906_v32 = vpack.c.bf16 %v864_v28, %v863_v27 }
 0x14b   : > { %v905_v33 = vpack.c.bf16 %v862_v31, %v861_v30 }
 0x14d   : > { %v4036_v34 = vpop.f32.mrb[44].mxu0  ;;  %4110 = vmatprep.mubr.bf16.mxu1 %v905_v33 }
 0x14e   : > { %v742_v35 = vpop.f32.mrb[45].mxu0  ;;  %4111 = vmatmul.mubr.bf16.gmra.mrb[40].mxu1 %v906_v32  ;;  %v867_v37 = vmax.f32 %v4036_v34, 0.0 }
 0x14f   : > { %v4037_v36 = vpop.f32.mrb[46].mxu0  ;;  %v865_v40 = vmax.f32 %v742_v35, 0.0 }
 0x150   : > { %v868_v38 = vmax.f32 %v4037_v36, 0.0  ;;  %v745_v39 = vpop.f32.mrb[47].mxu0 }
 0x151   : > { %v866_v41 = vmax.f32 %v745_v39, 0.0 }
 0x152   : > { %v908_v42 = vpack.c.bf16 %v868_v38, %v867_v37 }
 0x153   : > { %v907_v43 = vpack.c.bf16 %v866_v41, %v865_v40 }
 0x155   : > { %v4040_v44 = vpop.f32.mrb[48].mxu0  ;;  %4114 = vmatprep.mubr.bf16.mxu1 %v907_v43 }
 0x156   : > { %v758_v45 = vpop.f32.mrb[49].mxu0  ;;  %4115 = vmatmul.mubr.bf16.gmra.mrb[44].mxu1 %v908_v42  ;;  %v871_v47 = vmax.f32 %v4040_v44, 0.0 }
 0x157   : > { %v4041_v46 = vpop.f32.mrb[50].mxu0  ;;  %v869_v50 = vmax.f32 %v758_v45, 0.0 }
 0x158   : > { %v872_v48 = vmax.f32 %v4041_v46, 0.0  ;;  %v761_v49 = vpop.f32.mrb[51].mxu0 }
 0x159   : > { %v870_v51 = vmax.f32 %v761_v49, 0.0 }
 0x15a   : > { %v910_v52 = vpack.c.bf16 %v872_v48, %v871_v47 }
 0x15b   : > { %v909_v53 = vpack.c.bf16 %v870_v51, %v869_v50 }
 0x15d   : > { %v4044_v54 = vpop.f32.mrb[52].mxu0  ;;  %4118 = vmatprep.mubr.bf16.mxu1 %v909_v53 }
 0x15e   : > { %v774_v55 = vpop.f32.mrb[53].mxu0  ;;  %4119 = vmatmul.mubr.bf16.gmra.mrb[48].mxu1 %v910_v52  ;;  %v875_v57 = vmax.f32 %v4044_v54, 0.0 }
 0x15f   : > { %v4045_v56 = vpop.f32.mrb[54].mxu0  ;;  %v873_v60 = vmax.f32 %v774_v55, 0.0 }
 0x160   : > { %v876_v58 = vmax.f32 %v4045_v56, 0.0  ;;  %v777_v59 = vpop.f32.mrb[55].mxu0 }
 0x161   : > { %v874_v61 = vmax.f32 %v777_v59, 0.0 }
 0x162   : > { %v912_v62 = vpack.c.bf16 %v876_v58, %v875_v57 }
 0x163   : > { %v911_v63 = vpack.c.bf16 %v874_v61, %v873_v60 }
 0x165   : > { %v4048_v0 = vpop.f32.mrb[56].mxu0  ;;  %4122 = vmatprep.mubr.bf16.mxu1 %v911_v63 }
 0x166   : > { %v790_v1 = vpop.f32.mrb[57].mxu0  ;;  %4123 = vmatmul.mubr.bf16.gmra.mrb[52].mxu1 %v912_v62  ;;  %v879_v3 = vmax.f32 %v4048_v0, 0.0 }
 0x167   : > { %v4049_v2 = vpop.f32.mrb[58].mxu0  ;;  %v877_v6 = vmax.f32 %v790_v1, 0.0 }
 0x168   : > { %v880_v4 = vmax.f32 %v4049_v2, 0.0  ;;  %v793_v5 = vpop.f32.mrb[59].mxu0 }
 0x169   : > { %v878_v7 = vmax.f32 %v793_v5, 0.0 }
 0x16a   : > { %v914_v8 = vpack.c.bf16 %v880_v4, %v879_v3 }
 0x16b   : > { %v913_v9 = vpack.c.bf16 %v878_v7, %v877_v6 }
 0x16d   : > { %v4052_v10 = vpop.f32.mrb[60].mxu0  ;;  %4126 = vmatprep.mubr.bf16.mxu1 %v913_v9 }
 0x16e   : > { %v806_v11 = vpop.f32.mrb[61].mxu0  ;;  %4127 = vmatmul.mubr.bf16.gmra.mrb[56].mxu1 %v914_v8  ;;  %v883_v13 = vmax.f32 %v4052_v10, 0.0 }
 0x16f   : > { %v4053_v12 = vpop.f32.mrb[62].mxu0  ;;  %v881_v16 = vmax.f32 %v806_v11, 0.0 }
 0x170   : > { %v884_v14 = vmax.f32 %v4053_v12, 0.0  ;;  %v809_v15 = vpop.f32.mrb[63].mxu0 }
 0x171   : > { %v882_v17 = vmax.f32 %v809_v15, 0.0 }
 0x172   : > { %v916_v18 = vpack.c.bf16 %v884_v14, %v883_v13 }
 0x173   : > { %v915_v19 = vpack.c.bf16 %v882_v17, %v881_v16 }
 0x175   : > { %4130 = vmatprep.mubr.bf16.mxu1 %v915_v19 }
 0x176   : > { %4131 = vmatmul.mubr.bf16.gmra.mrb[60].mxu1 %v916_v18 }
 0x1d1   : > { %v4072_v21 = vpop.f32.mrb[0].mxu1 }
 0x1d2   : > { %v1015_v22 = vpop.f32.mrb[1].mxu1  ;;  %v1272_v25 = vmax.f32 %v4072_v21, 0.0 }
 0x1d3   : > { %v4073_v24 = vpop.f32.mrb[2].mxu1  ;;  %v1270_v28 = vmax.f32 %v1015_v22, 0.0 }
 0x1d4   : > { %v1273_v26 = vmax.f32 %v4073_v24, 0.0  ;;  %v1018_v27 = vpop.f32.mrb[3].mxu1 }
 0x1d5   : > { %v1271_v29 = vmax.f32 %v1018_v27, 0.0 }
 0x1d6   : > { %v1335_v30 = vpack.c.bf16 %v1273_v26, %v1272_v25 }
 0x1d7   : > { %v1334_v31 = vpack.c.bf16 %v1271_v29, %v1270_v28 }
 0x1d9   : > { %v4076_v32 = vpop.f32.mrb[4].mxu1  ;;  %4142 = vmatprep.mubr.msk.bf16.mxu0 %vm1398_vm2, %v1334_v31 }
 0x1da   : > { %v1031_v33 = vpop.f32.mrb[5].mxu1  ;;  %4143 = vmatmul.mubr.msk.bf16.vlgmr.msra.gmra.mrb[64].mxu0 %vm1398_vm2, %v1335_v30  ;;  %v1276_v35 = vmax.f32 %v4076_v32, 0.0 }
 0x1db   : > { %v4077_v34 = vpop.f32.mrb[6].mxu1  ;;  %v1274_v38 = vmax.f32 %v1031_v33, 0.0 }
 0x1dc   : > { %v1277_v36 = vmax.f32 %v4077_v34, 0.0  ;;  %v1034_v37 = vpop.f32.mrb[7].mxu1 }
 0x1dd   : > { %v1275_v39 = vmax.f32 %v1034_v37, 0.0 }
 0x1de   : > { %v1337_v40 = vpack.c.bf16 %v1277_v36, %v1276_v35 }
 0x1df   : > { %v1336_v41 = vpack.c.bf16 %v1275_v39, %v1274_v38 }
 0x1e1   : > { %v4080_v42 = vpop.f32.mrb[8].mxu1  ;;  %4146 = vmatprep.mubr.msk.bf16.mxu0 %vm1398_vm2, %v1336_v41 }
 0x1e2   : > { %v1047_v43 = vpop.f32.mrb[9].mxu1  ;;  %4147 = vmatmul.mubr.msk.bf16.gmra.mrb[68].mxu0 %vm1398_vm2, %v1337_v40  ;;  %v1280_v45 = vmax.f32 %v4080_v42, 0.0 }
 0x1e3   : > { %v4081_v44 = vpop.f32.mrb[10].mxu1  ;;  %v1278_v48 = vmax.f32 %v1047_v43, 0.0 }
 0x1e4   : > { %v1281_v46 = vmax.f32 %v4081_v44, 0.0  ;;  %v1050_v47 = vpop.f32.mrb[11].mxu1 }
 0x1e5   : > { %v1279_v49 = vmax.f32 %v1050_v47, 0.0 }
 0x1e6   : > { %v1339_v50 = vpack.c.bf16 %v1281_v46, %v1280_v45 }
 0x1e7   : > { %v1338_v51 = vpack.c.bf16 %v1279_v49, %v1278_v48 }
 0x1e9   : > { %v4084_v52 = vpop.f32.mrb[12].mxu1  ;;  %4150 = vmatprep.mubr.msk.bf16.mxu0 %vm1398_vm2, %v1338_v51 }
 0x1ea   : > { %v1063_v53 = vpop.f32.mrb[13].mxu1  ;;  %4151 = vmatmul.mubr.msk.bf16.gmra.mrb[72].mxu0 %vm1398_vm2, %v1339_v50  ;;  %v1284_v55 = vmax.f32 %v4084_v52, 0.0 }
 0x1eb   : > { %v4085_v54 = vpop.f32.mrb[14].mxu1  ;;  %v1282_v58 = vmax.f32 %v1063_v53, 0.0 }
 0x1ec   : > { %v1285_v56 = vmax.f32 %v4085_v54, 0.0  ;;  %v1066_v57 = vpop.f32.mrb[15].mxu1 }
 0x1ed   : > { %v1283_v59 = vmax.f32 %v1066_v57, 0.0 }
 0x1ee   : > { %v1341_v60 = vpack.c.bf16 %v1285_v56, %v1284_v55 }
 0x1ef   : > { %v1340_v61 = vpack.c.bf16 %v1283_v59, %v1282_v58 }
 0x1f1   : > { %v4088_v62 = vpop.f32.mrb[16].mxu1  ;;  %4154 = vmatprep.mubr.msk.bf16.mxu0 %vm1398_vm2, %v1340_v61 }
 0x1f2   : > { %v1079_v63 = vpop.f32.mrb[17].mxu1  ;;  %4155 = vmatmul.mubr.msk.bf16.gmra.mrb[76].mxu0 %vm1398_vm2, %v1341_v60  ;;  %v1288_v1 = vmax.f32 %v4088_v62, 0.0 }
 0x1f3   : > { %v4089_v0 = vpop.f32.mrb[18].mxu1  ;;  %v1286_v4 = vmax.f32 %v1079_v63, 0.0 }
 0x1f4   : > { %v1289_v2 = vmax.f32 %v4089_v0, 0.0  ;;  %v1082_v3 = vpop.f32.mrb[19].mxu1 }
 0x1f5   : > { %v1287_v5 = vmax.f32 %v1082_v3, 0.0 }
 0x1f6   : > { %v1343_v6 = vpack.c.bf16 %v1289_v2, %v1288_v1 }
 0x1f7   : > { %v1342_v7 = vpack.c.bf16 %v1287_v5, %v1286_v4 }
 0x1f9   : > { %v4092_v8 = vpop.f32.mrb[20].mxu1  ;;  %4158 = vmatprep.mubr.msk.bf16.mxu0 %vm1398_vm2, %v1342_v7 }
 0x1fa   : > { %v1095_v9 = vpop.f32.mrb[21].mxu1  ;;  %4159 = vmatmul.mubr.msk.bf16.gmra.mrb[80].mxu0 %vm1398_vm2, %v1343_v6  ;;  %v1292_v11 = vmax.f32 %v4092_v8, 0.0 }
 0x1fb   : > { %v4093_v10 = vpop.f32.mrb[22].mxu1  ;;  %v1290_v14 = vmax.f32 %v1095_v9, 0.0 }
 0x1fc   : > { %v1293_v12 = vmax.f32 %v4093_v10, 0.0  ;;  %v1098_v13 = vpop.f32.mrb[23].mxu1 }
 0x1fd   : > { %v1291_v15 = vmax.f32 %v1098_v13, 0.0 }
 0x1fe   : > { %v1345_v16 = vpack.c.bf16 %v1293_v12, %v1292_v11 }
 0x1ff   : > { %v1344_v17 = vpack.c.bf16 %v1291_v15, %v1290_v14 }
 0x201   : > { %v4096_v18 = vpop.f32.mrb[24].mxu1  ;;  %4162 = vmatprep.mubr.msk.bf16.mxu0 %vm1398_vm2, %v1344_v17 }
 0x202   : > { %v1111_v19 = vpop.f32.mrb[25].mxu1  ;;  %4163 = vmatmul.mubr.msk.bf16.gmra.mrb[84].mxu0 %vm1398_vm2, %v1345_v16  ;;  %v1296_v21 = vmax.f32 %v4096_v18, 0.0 }
 0x203   : > { %v4097_v20 = vpop.f32.mrb[26].mxu1  ;;  %v1294_v24 = vmax.f32 %v1111_v19, 0.0 }
 0x204   : > { %v1297_v22 = vmax.f32 %v4097_v20, 0.0  ;;  %v1114_v23 = vpop.f32.mrb[27].mxu1 }
 0x205   : > { %v1295_v25 = vmax.f32 %v1114_v23, 0.0 }
 0x206   : > { %v1347_v26 = vpack.c.bf16 %v1297_v22, %v1296_v21 }
 0x207   : > { %v1346_v27 = vpack.c.bf16 %v1295_v25, %v1294_v24 }
 0x209   : > { %v4100_v28 = vpop.f32.mrb[28].mxu1  ;;  %4166 = vmatprep.mubr.msk.bf16.mxu0 %vm1398_vm2, %v1346_v27 }
 0x20a   : > { %v1127_v29 = vpop.f32.mrb[29].mxu1  ;;  %4167 = vmatmul.mubr.msk.bf16.gmra.mrb[88].mxu0 %vm1398_vm2, %v1347_v26  ;;  %v1300_v31 = vmax.f32 %v4100_v28, 0.0 }
 0x20b   : > { %v4101_v30 = vpop.f32.mrb[30].mxu1  ;;  %v1298_v34 = vmax.f32 %v1127_v29, 0.0 }
 0x20c   : > { %v1301_v32 = vmax.f32 %v4101_v30, 0.0  ;;  %v1130_v33 = vpop.f32.mrb[31].mxu1 }
 0x20d   : > { %v1299_v35 = vmax.f32 %v1130_v33, 0.0 }
 0x20e   : > { %v1349_v36 = vpack.c.bf16 %v1301_v32, %v1300_v31 }
 0x20f   : > { %v1348_v37 = vpack.c.bf16 %v1299_v35, %v1298_v34 }
 0x211   : > { %v4104_v38 = vpop.f32.mrb[32].mxu1  ;;  %4170 = vmatprep.mubr.msk.bf16.mxu0 %vm1398_vm2, %v1348_v37 }
 0x212   : > { %v1143_v39 = vpop.f32.mrb[33].mxu1  ;;  %4171 = vmatmul.mubr.msk.bf16.gmra.mrb[92].mxu0 %vm1398_vm2, %v1349_v36  ;;  %v1304_v41 = vmax.f32 %v4104_v38, 0.0 }
 0x213   : > { %v4105_v40 = vpop.f32.mrb[34].mxu1  ;;  %v1302_v44 = vmax.f32 %v1143_v39, 0.0 }
 0x214   : > { %v1305_v42 = vmax.f32 %v4105_v40, 0.0  ;;  %v1146_v43 = vpop.f32.mrb[35].mxu1 }
 0x215   : > { %v1303_v45 = vmax.f32 %v1146_v43, 0.0 }
 0x216   : > { %v1351_v46 = vpack.c.bf16 %v1305_v42, %v1304_v41 }
 0x217   : > { %v1350_v47 = vpack.c.bf16 %v1303_v45, %v1302_v44 }
 0x219   : > { %v4108_v48 = vpop.f32.mrb[36].mxu1  ;;  %4174 = vmatprep.mubr.msk.bf16.mxu0 %vm1398_vm2, %v1350_v47 }
 0x21a   : > { %v1159_v49 = vpop.f32.mrb[37].mxu1  ;;  %4175 = vmatmul.mubr.msk.bf16.gmra.mrb[96].mxu0 %vm1398_vm2, %v1351_v46  ;;  %v1308_v51 = vmax.f32 %v4108_v48, 0.0 }
 0x21b   : > { %v4109_v50 = vpop.f32.mrb[38].mxu1  ;;  %v1306_v54 = vmax.f32 %v1159_v49, 0.0 }
 0x21c   : > { %v1309_v52 = vmax.f32 %v4109_v50, 0.0  ;;  %v1162_v53 = vpop.f32.mrb[39].mxu1 }
 0x21d   : > { %v1307_v55 = vmax.f32 %v1162_v53, 0.0 }
 0x21e   : > { %v1353_v56 = vpack.c.bf16 %v1309_v52, %v1308_v51 }
 0x21f   : > { %v1352_v57 = vpack.c.bf16 %v1307_v55, %v1306_v54 }
 0x221   : > { %v4112_v58 = vpop.f32.mrb[40].mxu1  ;;  %4178 = vmatprep.mubr.msk.bf16.mxu0 %vm1398_vm2, %v1352_v57 }
 0x222   : > { %v1175_v59 = vpop.f32.mrb[41].mxu1  ;;  %4179 = vmatmul.mubr.msk.bf16.gmra.mrb[100].mxu0 %vm1398_vm2, %v1353_v56  ;;  %v1312_v61 = vmax.f32 %v4112_v58, 0.0 }
 0x223   : > { %v4113_v60 = vpop.f32.mrb[42].mxu1  ;;  %v1310_v0 = vmax.f32 %v1175_v59, 0.0 }
 0x224   : > { %v1313_v62 = vmax.f32 %v4113_v60, 0.0  ;;  %v1178_v63 = vpop.f32.mrb[43].mxu1 }
 0x225   : > { %v1311_v1 = vmax.f32 %v1178_v63, 0.0 }
 0x226   : > { %v1355_v2 = vpack.c.bf16 %v1313_v62, %v1312_v61 }
 0x227   : > { %v1354_v3 = vpack.c.bf16 %v1311_v1, %v1310_v0 }
 0x229   : > { %v4116_v4 = vpop.f32.mrb[44].mxu1  ;;  %4182 = vmatprep.mubr.msk.bf16.mxu0 %vm1398_vm2, %v1354_v3 }
 0x22a   : > { %v1191_v5 = vpop.f32.mrb[45].mxu1  ;;  %4183 = vmatmul.mubr.msk.bf16.gmra.mrb[104].mxu0 %vm1398_vm2, %v1355_v2  ;;  %v1316_v7 = vmax.f32 %v4116_v4, 0.0 }
 0x22b   : > { %v4117_v6 = vpop.f32.mrb[46].mxu1  ;;  %v1314_v10 = vmax.f32 %v1191_v5, 0.0 }
 0x22c   : > { %v1317_v8 = vmax.f32 %v4117_v6, 0.0  ;;  %v1194_v9 = vpop.f32.mrb[47].mxu1 }
 0x22d   : > { %v1315_v11 = vmax.f32 %v1194_v9, 0.0 }
 0x22e   : > { %v1357_v12 = vpack.c.bf16 %v1317_v8, %v1316_v7 }
 0x22f   : > { %v1356_v13 = vpack.c.bf16 %v1315_v11, %v1314_v10 }
 0x231   : > { %v4120_v14 = vpop.f32.mrb[48].mxu1  ;;  %4186 = vmatprep.mubr.msk.bf16.mxu0 %vm1398_vm2, %v1356_v13 }
 0x232   : > { %v1207_v15 = vpop.f32.mrb[49].mxu1  ;;  %4187 = vmatmul.mubr.msk.bf16.gmra.mrb[108].mxu0 %vm1398_vm2, %v1357_v12  ;;  %v1320_v17 = vmax.f32 %v4120_v14, 0.0 }
 0x233   : > { %v4121_v16 = vpop.f32.mrb[50].mxu1  ;;  %v1318_v20 = vmax.f32 %v1207_v15, 0.0 }
 0x234   : > { %v1321_v18 = vmax.f32 %v4121_v16, 0.0  ;;  %v1210_v19 = vpop.f32.mrb[51].mxu1 }
 0x235   : > { %v1319_v21 = vmax.f32 %v1210_v19, 0.0 }
 0x236   : > { %v1359_v22 = vpack.c.bf16 %v1321_v18, %v1320_v17 }
 0x237   : > { %v1358_v23 = vpack.c.bf16 %v1319_v21, %v1318_v20 }
 0x239   : > { %v4124_v24 = vpop.f32.mrb[52].mxu1  ;;  %4190 = vmatprep.mubr.msk.bf16.mxu0 %vm1398_vm2, %v1358_v23 }
 0x23a   : > { %v1223_v25 = vpop.f32.mrb[53].mxu1  ;;  %4191 = vmatmul.mubr.msk.bf16.gmra.mrb[112].mxu0 %vm1398_vm2, %v1359_v22  ;;  %v1324_v27 = vmax.f32 %v4124_v24, 0.0 }
 0x23b   : > { %v4125_v26 = vpop.f32.mrb[54].mxu1  ;;  %v1322_v30 = vmax.f32 %v1223_v25, 0.0 }
 0x23c   : > { %v1325_v28 = vmax.f32 %v4125_v26, 0.0  ;;  %v1226_v29 = vpop.f32.mrb[55].mxu1 }
 0x23d   : > { %v1323_v31 = vmax.f32 %v1226_v29, 0.0 }
 0x23e   : > { %v1361_v32 = vpack.c.bf16 %v1325_v28, %v1324_v27 }
 0x23f   : > { %v1360_v33 = vpack.c.bf16 %v1323_v31, %v1322_v30 }
 0x241   : > { %v4128_v34 = vpop.f32.mrb[56].mxu1  ;;  %4194 = vmatprep.mubr.msk.bf16.mxu0 %vm1398_vm2, %v1360_v33 }
 0x242   : > { %v1239_v35 = vpop.f32.mrb[57].mxu1  ;;  %4195 = vmatmul.mubr.msk.bf16.gmra.mrb[116].mxu0 %vm1398_vm2, %v1361_v32  ;;  %v1328_v37 = vmax.f32 %v4128_v34, 0.0 }
 0x243   : > { %v4129_v36 = vpop.f32.mrb[58].mxu1  ;;  %v1326_v40 = vmax.f32 %v1239_v35, 0.0 }
 0x244   : > { %v1329_v38 = vmax.f32 %v4129_v36, 0.0  ;;  %v1242_v39 = vpop.f32.mrb[59].mxu1 }
 0x245   : > { %v1327_v41 = vmax.f32 %v1242_v39, 0.0 }
 0x246   : > { %v1363_v42 = vpack.c.bf16 %v1329_v38, %v1328_v37 }
 0x247   : > { %v1362_v43 = vpack.c.bf16 %v1327_v41, %v1326_v40 }
 0x249   : > { %v4132_v44 = vpop.f32.mrb[60].mxu1  ;;  %4198 = vmatprep.mubr.msk.bf16.mxu0 %vm1398_vm2, %v1362_v43 }
 0x24a   : > { %v1255_v45 = vpop.f32.mrb[61].mxu1  ;;  %4199 = vmatmul.mubr.msk.bf16.gmra.mrb[120].mxu0 %vm1398_vm2, %v1363_v42  ;;  %v1332_v47 = vmax.f32 %v4132_v44, 0.0 }
 0x24b   : > { %v4133_v46 = vpop.f32.mrb[62].mxu1  ;;  %v1330_v50 = vmax.f32 %v1255_v45, 0.0 }
 0x24c   : > { %v1333_v48 = vmax.f32 %v4133_v46, 0.0  ;;  %v1258_v49 = vpop.f32.mrb[63].mxu1 }
 0x24d   : > { %v1331_v51 = vmax.f32 %v1258_v49, 0.0 }
 0x24e   : > { %v1365_v52 = vpack.c.bf16 %v1333_v48, %v1332_v47 }
 0x24f   : > { %v1364_v53 = vpack.c.bf16 %v1331_v51, %v1330_v50 }
 0x251   : > { %4202 = vmatprep.mubr.msk.bf16.mxu0 %vm1398_vm2, %v1364_v53 }
 0x252   : > { %4203 = vmatmul.mubr.msk.bf16.gmra.mrb[124].mxu0 %vm1398_vm2, %v1365_v52 }
 0x2ad   : > { %v4144_v54 = vpop.f32.mrb[64].mxu0 }
 0x2ae   : > { %v1529_v55 = vpop.f32.mrb[65].mxu0  ;;  %v1786_v57 = vmax.f32 %v4144_v54, 0.0 }
 0x2af   : > { %v4145_v56 = vpop.f32.mrb[66].mxu0  ;;  %v1784_v60 = vmax.f32 %v1529_v55, 0.0 }
 0x2b0   : > { %v1787_v58 = vmax.f32 %v4145_v56, 0.0  ;;  %v1532_v59 = vpop.f32.mrb[67].mxu0 }
 0x2b1   : > { %v1785_v61 = vmax.f32 %v1532_v59, 0.0 }
 0x2b2   : > { %v1849_v62 = vpack.c.bf16 %v1787_v58, %v1786_v57 }
 0x2b3   : > { %v1848_v63 = vpack.c.bf16 %v1785_v61, %v1784_v60 }
 0x2b5   : > { %v4148_v0 = vpop.f32.mrb[68].mxu0  ;;  %4210 = vmatprep.mubr.msk.bf16.mxu1 %vm1896_vm3, %v1848_v63 }
 0x2b6   : > { %v1545_v1 = vpop.f32.mrb[69].mxu0  ;;  %4211 = vmatmul.mubr.msk.bf16.vlgmr.msra.gmra.mrb[64].mxu1 %vm1896_vm3, %v1849_v62  ;;  %v1790_v3 = vmax.f32 %v4148_v0, 0.0 }
 0x2b7   : > { %v4149_v2 = vpop.f32.mrb[70].mxu0  ;;  %v1788_v6 = vmax.f32 %v1545_v1, 0.0 }
 0x2b8   : > { %v1791_v4 = vmax.f32 %v4149_v2, 0.0  ;;  %v1548_v5 = vpop.f32.mrb[71].mxu0 }
 0x2b9   : > { %v1789_v7 = vmax.f32 %v1548_v5, 0.0 }
 0x2ba   : > { %v1851_v8 = vpack.c.bf16 %v1791_v4, %v1790_v3 }
 0x2bb   : > { %v1850_v9 = vpack.c.bf16 %v1789_v7, %v1788_v6 }
 0x2bd   : > { %v4152_v10 = vpop.f32.mrb[72].mxu0  ;;  %4214 = vmatprep.mubr.msk.bf16.mxu1 %vm1896_vm3, %v1850_v9 }
 0x2be   : > { %v1561_v11 = vpop.f32.mrb[73].mxu0  ;;  %4215 = vmatmul.mubr.msk.bf16.gmra.mrb[68].mxu1 %vm1896_vm3, %v1851_v8  ;;  %v1794_v13 = vmax.f32 %v4152_v10, 0.0 }
 0x2bf   : > { %v4153_v12 = vpop.f32.mrb[74].mxu0  ;;  %v1792_v16 = vmax.f32 %v1561_v11, 0.0 }
 0x2c0   : > { %v1795_v14 = vmax.f32 %v4153_v12, 0.0  ;;  %v1564_v15 = vpop.f32.mrb[75].mxu0 }
 0x2c1   : > { %v1793_v17 = vmax.f32 %v1564_v15, 0.0 }
 0x2c2   : > { %v1853_v18 = vpack.c.bf16 %v1795_v14, %v1794_v13 }
 0x2c3   : > { %v1852_v19 = vpack.c.bf16 %v1793_v17, %v1792_v16 }
 0x2c5   : > { %v4156_v20 = vpop.f32.mrb[76].mxu0  ;;  %4218 = vmatprep.mubr.msk.bf16.mxu1 %vm1896_vm3, %v1852_v19 }
 0x2c6   : > { %v1577_v21 = vpop.f32.mrb[77].mxu0  ;;  %4219 = vmatmul.mubr.msk.bf16.gmra.mrb[72].mxu1 %vm1896_vm3, %v1853_v18  ;;  %v1798_v23 = vmax.f32 %v4156_v20, 0.0 }
 0x2c7   : > { %v4157_v22 = vpop.f32.mrb[78].mxu0  ;;  %v1796_v26 = vmax.f32 %v1577_v21, 0.0 }
 0x2c8   : > { %v1799_v24 = vmax.f32 %v4157_v22, 0.0  ;;  %v1580_v25 = vpop.f32.mrb[79].mxu0 }
 0x2c9   : > { %v1797_v27 = vmax.f32 %v1580_v25, 0.0 }
 0x2ca   : > { %v1855_v28 = vpack.c.bf16 %v1799_v24, %v1798_v23 }
 0x2cb   : > { %v1854_v29 = vpack.c.bf16 %v1797_v27, %v1796_v26 }
 0x2cd   : > { %v4160_v30 = vpop.f32.mrb[80].mxu0  ;;  %4222 = vmatprep.mubr.msk.bf16.mxu1 %vm1896_vm3, %v1854_v29 }
 0x2ce   : > { %v1593_v31 = vpop.f32.mrb[81].mxu0  ;;  %4223 = vmatmul.mubr.msk.bf16.gmra.mrb[76].mxu1 %vm1896_vm3, %v1855_v28  ;;  %v1802_v33 = vmax.f32 %v4160_v30, 0.0 }
 0x2cf   : > { %v4161_v32 = vpop.f32.mrb[82].mxu0  ;;  %v1800_v36 = vmax.f32 %v1593_v31, 0.0 }
 0x2d0   : > { %v1803_v34 = vmax.f32 %v4161_v32, 0.0  ;;  %v1596_v35 = vpop.f32.mrb[83].mxu0 }
 0x2d1   : > { %v1801_v37 = vmax.f32 %v1596_v35, 0.0 }
 0x2d2   : > { %v1857_v38 = vpack.c.bf16 %v1803_v34, %v1802_v33 }
 0x2d3   : > { %v1856_v39 = vpack.c.bf16 %v1801_v37, %v1800_v36 }
 0x2d5   : > { %v4164_v40 = vpop.f32.mrb[84].mxu0  ;;  %4226 = vmatprep.mubr.msk.bf16.mxu1 %vm1896_vm3, %v1856_v39 }
 0x2d6   : > { %v1609_v41 = vpop.f32.mrb[85].mxu0  ;;  %4227 = vmatmul.mubr.msk.bf16.gmra.mrb[80].mxu1 %vm1896_vm3, %v1857_v38  ;;  %v1806_v43 = vmax.f32 %v4164_v40, 0.0 }
 0x2d7   : > { %v4165_v42 = vpop.f32.mrb[86].mxu0  ;;  %v1804_v46 = vmax.f32 %v1609_v41, 0.0 }
 0x2d8   : > { %v1807_v44 = vmax.f32 %v4165_v42, 0.0  ;;  %v1612_v45 = vpop.f32.mrb[87].mxu0 }
 0x2d9   : > { %v1805_v47 = vmax.f32 %v1612_v45, 0.0 }
 0x2da   : > { %v1859_v48 = vpack.c.bf16 %v1807_v44, %v1806_v43 }
 0x2db   : > { %v1858_v49 = vpack.c.bf16 %v1805_v47, %v1804_v46 }
 0x2dd   : > { %v4168_v50 = vpop.f32.mrb[88].mxu0  ;;  %4230 = vmatprep.mubr.msk.bf16.mxu1 %vm1896_vm3, %v1858_v49 }
 0x2de   : > { %v1625_v51 = vpop.f32.mrb[89].mxu0  ;;  %4231 = vmatmul.mubr.msk.bf16.gmra.mrb[84].mxu1 %vm1896_vm3, %v1859_v48  ;;  %v1810_v53 = vmax.f32 %v4168_v50, 0.0 }
 0x2df   : > { %v4169_v52 = vpop.f32.mrb[90].mxu0  ;;  %v1808_v56 = vmax.f32 %v1625_v51, 0.0 }
 0x2e0   : > { %v1811_v54 = vmax.f32 %v4169_v52, 0.0  ;;  %v1628_v55 = vpop.f32.mrb[91].mxu0 }
 0x2e1   : > { %v1809_v57 = vmax.f32 %v1628_v55, 0.0 }
 0x2e2   : > { %v1861_v58 = vpack.c.bf16 %v1811_v54, %v1810_v53 }
 0x2e3   : > { %v1860_v59 = vpack.c.bf16 %v1809_v57, %v1808_v56 }
 0x2e5   : > { %v4172_v60 = vpop.f32.mrb[92].mxu0  ;;  %4234 = vmatprep.mubr.msk.bf16.mxu1 %vm1896_vm3, %v1860_v59 }
 0x2e6   : > { %v1641_v61 = vpop.f32.mrb[93].mxu0  ;;  %4235 = vmatmul.mubr.msk.bf16.gmra.mrb[88].mxu1 %vm1896_vm3, %v1861_v58  ;;  %v1814_v63 = vmax.f32 %v4172_v60, 0.0 }
 0x2e7   : > { %v4173_v62 = vpop.f32.mrb[94].mxu0  ;;  %v1812_v2 = vmax.f32 %v1641_v61, 0.0 }
 0x2e8   : > { %v1815_v0 = vmax.f32 %v4173_v62, 0.0  ;;  %v1644_v1 = vpop.f32.mrb[95].mxu0 }
 0x2e9   : > { %v1813_v3 = vmax.f32 %v1644_v1, 0.0 }
 0x2ea   : > { %v1863_v4 = vpack.c.bf16 %v1815_v0, %v1814_v63 }
 0x2eb   : > { %v1862_v5 = vpack.c.bf16 %v1813_v3, %v1812_v2 }
 0x2ed   : > { %v4176_v6 = vpop.f32.mrb[96].mxu0  ;;  %4238 = vmatprep.mubr.msk.bf16.mxu1 %vm1896_vm3, %v1862_v5 }
 0x2ee   : > { %v1657_v7 = vpop.f32.mrb[97].mxu0  ;;  %4239 = vmatmul.mubr.msk.bf16.gmra.mrb[92].mxu1 %vm1896_vm3, %v1863_v4  ;;  %v1818_v9 = vmax.f32 %v4176_v6, 0.0 }
 0x2ef   : > { %v4177_v8 = vpop.f32.mrb[98].mxu0  ;;  %v1816_v12 = vmax.f32 %v1657_v7, 0.0 }
 0x2f0   : > { %v1819_v10 = vmax.f32 %v4177_v8, 0.0  ;;  %v1660_v11 = vpop.f32.mrb[99].mxu0 }
 0x2f1   : > { %v1817_v13 = vmax.f32 %v1660_v11, 0.0 }
 0x2f2   : > { %v1865_v14 = vpack.c.bf16 %v1819_v10, %v1818_v9 }
 0x2f3   : > { %v1864_v15 = vpack.c.bf16 %v1817_v13, %v1816_v12 }
 0x2f5   : > { %v4180_v16 = vpop.f32.mrb[100].mxu0  ;;  %4242 = vmatprep.mubr.msk.bf16.mxu1 %vm1896_vm3, %v1864_v15 }
 0x2f6   : > { %v1673_v17 = vpop.f32.mrb[101].mxu0  ;;  %4243 = vmatmul.mubr.msk.bf16.gmra.mrb[96].mxu1 %vm1896_vm3, %v1865_v14  ;;  %v1822_v19 = vmax.f32 %v4180_v16, 0.0 }
 0x2f7   : > { %v4181_v18 = vpop.f32.mrb[102].mxu0  ;;  %v1820_v22 = vmax.f32 %v1673_v17, 0.0 }
 0x2f8   : > { %v1823_v20 = vmax.f32 %v4181_v18, 0.0  ;;  %v1676_v21 = vpop.f32.mrb[103].mxu0 }
 0x2f9   : > { %v1821_v23 = vmax.f32 %v1676_v21, 0.0 }
 0x2fa   : > { %v1867_v24 = vpack.c.bf16 %v1823_v20, %v1822_v19 }
 0x2fb   : > { %v1866_v25 = vpack.c.bf16 %v1821_v23, %v1820_v22  ;;  %v5109_v23 = vld [vmem:[%s5456_s5] ss:$0 sm:$0xff] }
 0x2fd   : > { %v4184_v26 = vpop.f32.mrb[104].mxu0  ;;  %4246 = vmatprep.mubr.msk.bf16.mxu1 %vm1896_vm3, %v1866_v25 }
 0x2fe   : > { %v1689_v27 = vpop.f32.mrb[105].mxu0  ;;  %4247 = vmatmul.mubr.msk.bf16.gmra.mrb[100].mxu1 %vm1896_vm3, %v1867_v24  ;;  %v1826_v29 = vmax.f32 %v4184_v26, 0.0 }
 0x2ff   : > { %v4185_v28 = vpop.f32.mrb[106].mxu0  ;;  %v1824_v32 = vmax.f32 %v1689_v27, 0.0 }
 0x300   : > { %v1827_v30 = vmax.f32 %v4185_v28, 0.0  ;;  %v1692_v31 = vpop.f32.mrb[107].mxu0 }
 0x301   : > { %v1825_v33 = vmax.f32 %v1692_v31, 0.0 }
 0x302   : > { %v1869_v34 = vpack.c.bf16 %v1827_v30, %v1826_v29 }
 0x303   : > { %v1868_v35 = vpack.c.bf16 %v1825_v33, %v1824_v32 }
 0x305   : > { %v4188_v36 = vpop.f32.mrb[108].mxu0  ;;  %4250 = vmatprep.mubr.msk.bf16.mxu1 %vm1896_vm3, %v1868_v35 }
 0x306   : > { %v1705_v37 = vpop.f32.mrb[109].mxu0  ;;  %4251 = vmatmul.mubr.msk.bf16.gmra.mrb[104].mxu1 %vm1896_vm3, %v1869_v34  ;;  %v1830_v39 = vmax.f32 %v4188_v36, 0.0 }
 0x307   : > { %v4189_v38 = vpop.f32.mrb[110].mxu0  ;;  %v1828_v42 = vmax.f32 %v1705_v37, 0.0 }
 0x308   : > { %v1831_v40 = vmax.f32 %v4189_v38, 0.0  ;;  %v1708_v41 = vpop.f32.mrb[111].mxu0 }
 0x309   : > { %v1829_v43 = vmax.f32 %v1708_v41, 0.0 }
 0x30a   : > { %v1871_v44 = vpack.c.bf16 %v1831_v40, %v1830_v39 }
 0x30b   : > { %v1870_v45 = vpack.c.bf16 %v1829_v43, %v1828_v42 }
 0x30d   : > { %v4192_v46 = vpop.f32.mrb[112].mxu0  ;;  %4254 = vmatprep.mubr.msk.bf16.mxu1 %vm1896_vm3, %v1870_v45 }
 0x30e   : > { %v1721_v47 = vpop.f32.mrb[113].mxu0  ;;  %4255 = vmatmul.mubr.msk.bf16.gmra.mrb[108].mxu1 %vm1896_vm3, %v1871_v44  ;;  %v1834_v49 = vmax.f32 %v4192_v46, 0.0 }
 0x30f   : > { %v4193_v48 = vpop.f32.mrb[114].mxu0  ;;  %v1832_v52 = vmax.f32 %v1721_v47, 0.0 }
 0x310   : > { %v1835_v50 = vmax.f32 %v4193_v48, 0.0  ;;  %v1724_v51 = vpop.f32.mrb[115].mxu0 }
 0x311   : > { %v1833_v53 = vmax.f32 %v1724_v51, 0.0 }
 0x312   : > { %v1873_v54 = vpack.c.bf16 %v1835_v50, %v1834_v49 }
 0x313   : > { %v1872_v55 = vpack.c.bf16 %v1833_v53, %v1832_v52 }
 0x315   : > { %v4196_v56 = vpop.f32.mrb[116].mxu0  ;;  %4258 = vmatprep.mubr.msk.bf16.mxu1 %vm1896_vm3, %v1872_v55 }
 0x316   : > { %v1737_v57 = vpop.f32.mrb[117].mxu0  ;;  %4259 = vmatmul.mubr.msk.bf16.gmra.mrb[112].mxu1 %vm1896_vm3, %v1873_v54  ;;  %v1838_v59 = vmax.f32 %v4196_v56, 0.0 }
 0x317   : > { %v4197_v58 = vpop.f32.mrb[118].mxu0  ;;  %v1836_v62 = vmax.f32 %v1737_v57, 0.0 }
 0x318   : > { %v1839_v60 = vmax.f32 %v4197_v58, 0.0  ;;  %v1740_v61 = vpop.f32.mrb[119].mxu0 }
 0x319   : > { %v1837_v63 = vmax.f32 %v1740_v61, 0.0 }
 0x31a   : > { %v1875_v0 = vpack.c.bf16 %v1839_v60, %v1838_v59 }
 0x31b   : > { %v1874_v1 = vpack.c.bf16 %v1837_v63, %v1836_v62 }
 0x31d   : > { %v4200_v2 = vpop.f32.mrb[120].mxu0  ;;  %4262 = vmatprep.mubr.msk.bf16.mxu1 %vm1896_vm3, %v1874_v1 }
 0x31e   : > { %v1753_v3 = vpop.f32.mrb[121].mxu0  ;;  %4263 = vmatmul.mubr.msk.bf16.gmra.mrb[116].mxu1 %vm1896_vm3, %v1875_v0  ;;  %v1842_v5 = vmax.f32 %v4200_v2, 0.0 }
 0x31f   : > { %v4201_v4 = vpop.f32.mrb[122].mxu0  ;;  %v1840_v8 = vmax.f32 %v1753_v3, 0.0 }
 0x320   : > { %v1843_v6 = vmax.f32 %v4201_v4, 0.0  ;;  %v1756_v7 = vpop.f32.mrb[123].mxu0 }
 0x321   : > { %v1841_v9 = vmax.f32 %v1756_v7, 0.0 }
 0x322   : > { %v1877_v10 = vpack.c.bf16 %v1843_v6, %v1842_v5 }
 0x323   : > { %v1876_v11 = vpack.c.bf16 %v1841_v9, %v1840_v8 }
 0x325   : > { %v4204_v12 = vpop.f32.mrb[124].mxu0  ;;  %4266 = vmatprep.mubr.msk.bf16.mxu1 %vm1896_vm3, %v1876_v11 }
 0x326   : > { %v1769_v13 = vpop.f32.mrb[125].mxu0  ;;  %4267 = vmatmul.mubr.msk.bf16.gmra.mrb[120].mxu1 %vm1896_vm3, %v1877_v10  ;;  %v1846_v15 = vmax.f32 %v4204_v12, 0.0 }
 0x327   : > { %v4205_v14 = vpop.f32.mrb[126].mxu0  ;;  %v1844_v18 = vmax.f32 %v1769_v13, 0.0 }
 0x328   : > { %v1847_v16 = vmax.f32 %v4205_v14, 0.0  ;;  %v1772_v17 = vpop.f32.mrb[127].mxu0 }
 0x329   : > { %v1845_v19 = vmax.f32 %v1772_v17, 0.0 }
 0x32a   : > { %v1879_v20 = vpack.c.bf16 %v1847_v16, %v1846_v15 }
 0x32b   : > { %v1878_v21 = vpack.c.bf16 %v1845_v19, %v1844_v18 }
 0x32d   : > { %4270 = vmatprep.mubr.msk.bf16.mxu1 %vm1896_vm3, %v1878_v21 }
 0x32e   : > { %4271 = vmatmul.mubr.msk.bf16.gmra.mrb[124].mxu1 %vm1896_vm3, %v1879_v20 }
 0x389   : > { %v4212_v22 = vpop.f32.mrb[64].mxu1 }
 0x38a   : > { %v2284_v24 = vmax.f32 %v4212_v22, 0.0  ;;  %v2027_v25 = vpop.f32.mrb[65].mxu1 }
 0x38b   : > { %v2282_v26 = vmax.f32 %v2027_v25, 0.0  ;;  %v4213_v27 = vpop.f32.mrb[66].mxu1 }
 0x38c   : > { %v2285_v28 = vmax.f32 %v4213_v27, 0.0  ;;  %v2030_v29 = vpop.f32.mrb[67].mxu1  ;;  %v2355_v30 = vmul.f32 %v5109_v23, %v2284_v24 }
 0x38d   : > { %v2283_v31 = vmax.f32 %v2030_v29, 0.0  ;;  %v2353_v32 = vmul.f32 %v5109_v23, %v2282_v26 }
 0x38e   : > { %v2424_v33 = vsel %vm2417_vm4, %v2355_v30, 0.0  ;;  %v2356_v34 = vmul.f32 %v5109_v23, %v2285_v28 }
 0x38f   : > { %2425 = vadd.xlane.f32.xlu1 %v2424_v33  ;;  %v2418_v35 = vsel %vm2417_vm4, %v2353_v32, 0.0  ;;  %v2354_v36 = vmul.f32 %v5109_v23, %v2283_v31 }
 0x390   : > { %2419 = vadd.xlane.f32.xlu0 %v2418_v35  ;;  %v2427_v40 = vsel %vm2417_vm4, %v2356_v34, 0.0 }
 0x391   : > { %v4216_v37 = vpop.f32.mrb[68].mxu1  ;;  %v2421_v43 = vsel %vm2417_vm4, %v2354_v36, 0.0 }
 0x392   : > { %v2288_v38 = vmax.f32 %v4216_v37, 0.0  ;;  %v2043_v39 = vpop.f32.mrb[69].mxu1 }
 0x393   : > { %v2286_v41 = vmax.f32 %v2043_v39, 0.0  ;;  %2428 = vadd.xlane.f32.xlu1 %v2427_v40  ;;  %v4217_v42 = vpop.f32.mrb[70].mxu1 }
 0x394   : > { %v2289_v44 = vmax.f32 %v4217_v42, 0.0  ;;  %2422 = vadd.xlane.f32.xlu0 %v2421_v43  ;;  %v2046_v45 = vpop.f32.mrb[71].mxu1  ;;  %v2359_v46 = vmul.f32 %v5109_v23, %v2288_v38 }
 0x395   : > { %v2287_v47 = vmax.f32 %v2046_v45, 0.0  ;;  %v2357_v50 = vmul.f32 %v5109_v23, %v2286_v41 }
 0x396   : > { %v2436_v48 = vsel %vm2417_vm4, %v2359_v46, 0.0  ;;  %v2360_v49 = vmul.f32 %v5109_v23, %v2289_v44 }
 0x397   : > { %v2358_v52 = vmul.f32 %v5109_v23, %v2287_v47  ;;  %v2430_v58 = vsel %vm2417_vm4, %v2357_v50, 0.0 }
 0x398   : > { %2437 = vadd.xlane.f32.xlu0 %v2436_v48  ;;  %v2439_v51 = vsel %vm2417_vm4, %v2360_v49, 0.0 }
 0x399   : > { %2440 = vadd.xlane.f32.xlu1 %v2439_v51  ;;  %v4220_v53 = vpop.f32.mrb[72].mxu1  ;;  %v2433_v61 = vsel %vm2417_vm4, %v2358_v52, 0.0 }
 0x39a   : > { %v2292_v54 = vmax.f32 %v4220_v53, 0.0  ;;  %v2059_v55 = vpop.f32.mrb[73].mxu1 }
 0x39b   : > { %v2290_v56 = vmax.f32 %v2059_v55, 0.0  ;;  %v4221_v57 = vpop.f32.mrb[74].mxu1 }
 0x39c   : > { %v2293_v59 = vmax.f32 %v4221_v57, 0.0  ;;  %2431 = vadd.xlane.f32.xlu0 %v2430_v58  ;;  %v2062_v60 = vpop.f32.mrb[75].mxu1  ;;  %v2363_v62 = vmul.f32 %v5109_v23, %v2292_v54 }
 0x39d   : > { %v2291_v63 = vmax.f32 %v2062_v60, 0.0  ;;  %2434 = vadd.xlane.f32.xlu1 %v2433_v61  ;;  %v2361_v2 = vmul.f32 %v5109_v23, %v2290_v56 }
 0x39e   : > { %v2448_v0 = vsel %vm2417_vm4, %v2363_v62, 0.0  ;;  %v2364_v1 = vmul.f32 %v5109_v23, %v2293_v59 }
 0x39f   : > { %v2362_v4 = vmul.f32 %v5109_v23, %v2291_v63  ;;  %v2442_v10 = vsel %vm2417_vm4, %v2361_v2, 0.0 }
 0x3a0   : > { %2449 = vadd.xlane.f32.xlu0 %v2448_v0  ;;  %v2451_v3 = vsel %vm2417_vm4, %v2364_v1, 0.0 }
 0x3a1   : > { %2452 = vadd.xlane.f32.xlu1 %v2451_v3  ;;  %v4224_v5 = vpop.f32.mrb[76].mxu1  ;;  %v2445_v13 = vsel %vm2417_vm4, %v2362_v4, 0.0 }
 0x3a2   : > { %v2296_v6 = vmax.f32 %v4224_v5, 0.0  ;;  %v2075_v7 = vpop.f32.mrb[77].mxu1 }
 0x3a3   : > { %v2294_v8 = vmax.f32 %v2075_v7, 0.0  ;;  %v4225_v9 = vpop.f32.mrb[78].mxu1 }
 0x3a4   : > { %v2297_v11 = vmax.f32 %v4225_v9, 0.0  ;;  %2443 = vadd.xlane.f32.xlu0 %v2442_v10  ;;  %v2078_v12 = vpop.f32.mrb[79].mxu1  ;;  %v2367_v14 = vmul.f32 %v5109_v23, %v2296_v6 }
 0x3a5   : > { %v2295_v15 = vmax.f32 %v2078_v12, 0.0  ;;  %2446 = vadd.xlane.f32.xlu1 %v2445_v13  ;;  %v2365_v18 = vmul.f32 %v5109_v23, %v2294_v8 }
 0x3a6   : > { %v2460_v16 = vsel %vm2417_vm4, %v2367_v14, 0.0  ;;  %v2368_v17 = vmul.f32 %v5109_v23, %v2297_v11 }
 0x3a7   : > { %v2366_v20 = vmul.f32 %v5109_v23, %v2295_v15  ;;  %v2454_v27 = vsel %vm2417_vm4, %v2365_v18, 0.0 }
 0x3a8   : > { %2461 = vadd.xlane.f32.xlu0 %v2460_v16  ;;  %v2463_v19 = vsel %vm2417_vm4, %v2368_v17, 0.0 }
 0x3a9   : > { %2464 = vadd.xlane.f32.xlu1 %v2463_v19  ;;  %v4228_v21 = vpop.f32.mrb[80].mxu1  ;;  %v2457_v30 = vsel %vm2417_vm4, %v2366_v20, 0.0 }
 0x3aa   : > { %v2300_v22 = vmax.f32 %v4228_v21, 0.0  ;;  %v2091_v24 = vpop.f32.mrb[81].mxu1 }
 0x3ab   : > { %v2298_v25 = vmax.f32 %v2091_v24, 0.0  ;;  %v4229_v26 = vpop.f32.mrb[82].mxu1 }
 0x3ac   : > { %v2301_v28 = vmax.f32 %v4229_v26, 0.0  ;;  %2455 = vadd.xlane.f32.xlu0 %v2454_v27  ;;  %v2094_v29 = vpop.f32.mrb[83].mxu1  ;;  %v2371_v31 = vmul.f32 %v5109_v23, %v2300_v22 }
 0x3ad   : > { %v2299_v32 = vmax.f32 %v2094_v29, 0.0  ;;  %2458 = vadd.xlane.f32.xlu1 %v2457_v30  ;;  %v2369_v35 = vmul.f32 %v5109_v23, %v2298_v25 }
 0x3ae   : > { %v2472_v33 = vsel %vm2417_vm4, %v2371_v31, 0.0  ;;  %v2372_v34 = vmul.f32 %v5109_v23, %v2301_v28 }
 0x3af   : > { %v2370_v37 = vmul.f32 %v5109_v23, %v2299_v32  ;;  %v2466_v43 = vsel %vm2417_vm4, %v2369_v35, 0.0 }
 0x3b0   : > { %2473 = vadd.xlane.f32.xlu0 %v2472_v33  ;;  %v2475_v36 = vsel %vm2417_vm4, %v2372_v34, 0.0 }
 0x3b1   : > { %2476 = vadd.xlane.f32.xlu1 %v2475_v36  ;;  %v4232_v38 = vpop.f32.mrb[84].mxu1  ;;  %v2469_v46 = vsel %vm2417_vm4, %v2370_v37, 0.0 }
 0x3b2   : > { %v2304_v39 = vmax.f32 %v4232_v38, 0.0  ;;  %v2107_v40 = vpop.f32.mrb[85].mxu1 }
 0x3b3   : > { %v2302_v41 = vmax.f32 %v2107_v40, 0.0  ;;  %v4233_v42 = vpop.f32.mrb[86].mxu1 }
 0x3b4   : > { %v2305_v44 = vmax.f32 %v4233_v42, 0.0  ;;  %2467 = vadd.xlane.f32.xlu0 %v2466_v43  ;;  %v2110_v45 = vpop.f32.mrb[87].mxu1  ;;  %v2375_v47 = vmul.f32 %v5109_v23, %v2304_v39 }
 0x3b5   : > { %v2303_v48 = vmax.f32 %v2110_v45, 0.0  ;;  %2470 = vadd.xlane.f32.xlu1 %v2469_v46  ;;  %v2373_v51 = vmul.f32 %v5109_v23, %v2302_v41 }
 0x3b6   : > { %v2484_v49 = vsel %vm2417_vm4, %v2375_v47, 0.0  ;;  %v2376_v50 = vmul.f32 %v5109_v23, %v2305_v44 }
 0x3b7   : > { %v2374_v53 = vmul.f32 %v5109_v23, %v2303_v48  ;;  %v2478_v59 = vsel %vm2417_vm4, %v2373_v51, 0.0 }
 0x3b8   : > { %2485 = vadd.xlane.f32.xlu0 %v2484_v49  ;;  %v2487_v52 = vsel %vm2417_vm4, %v2376_v50, 0.0 }
 0x3b9   : > { %2488 = vadd.xlane.f32.xlu1 %v2487_v52  ;;  %v4236_v54 = vpop.f32.mrb[88].mxu1  ;;  %v2481_v62 = vsel %vm2417_vm4, %v2374_v53, 0.0 }
 0x3ba   : > { %v2308_v55 = vmax.f32 %v4236_v54, 0.0  ;;  %v2123_v56 = vpop.f32.mrb[89].mxu1 }
 0x3bb   : > { %v2306_v57 = vmax.f32 %v2123_v56, 0.0  ;;  %v4237_v58 = vpop.f32.mrb[90].mxu1 }
 0x3bc   : > { %v2309_v60 = vmax.f32 %v4237_v58, 0.0  ;;  %2479 = vadd.xlane.f32.xlu0 %v2478_v59  ;;  %v2126_v61 = vpop.f32.mrb[91].mxu1  ;;  %v2379_v63 = vmul.f32 %v5109_v23, %v2308_v55 }
 0x3bd   : > { %v2307_v0 = vmax.f32 %v2126_v61, 0.0  ;;  %2482 = vadd.xlane.f32.xlu1 %v2481_v62  ;;  %v2377_v3 = vmul.f32 %v5109_v23, %v2306_v57 }
 0x3be   : > { %v2496_v1 = vsel %vm2417_vm4, %v2379_v63, 0.0  ;;  %v2380_v2 = vmul.f32 %v5109_v23, %v2309_v60 }
 0x3bf   : > { %v2378_v5 = vmul.f32 %v5109_v23, %v2307_v0  ;;  %v2490_v11 = vsel %vm2417_vm4, %v2377_v3, 0.0 }
 0x3c0   : > { %2497 = vadd.xlane.f32.xlu0 %v2496_v1  ;;  %v2499_v4 = vsel %vm2417_vm4, %v2380_v2, 0.0 }
 0x3c1   : > { %2500 = vadd.xlane.f32.xlu1 %v2499_v4  ;;  %v4240_v6 = vpop.f32.mrb[92].mxu1  ;;  %v2493_v14 = vsel %vm2417_vm4, %v2378_v5, 0.0 }
 0x3c2   : > { %v2312_v7 = vmax.f32 %v4240_v6, 0.0  ;;  %v2139_v8 = vpop.f32.mrb[93].mxu1 }
 0x3c3   : > { %v2310_v9 = vmax.f32 %v2139_v8, 0.0  ;;  %v4241_v10 = vpop.f32.mrb[94].mxu1 }
 0x3c4   : > { %v2313_v12 = vmax.f32 %v4241_v10, 0.0  ;;  %2491 = vadd.xlane.f32.xlu0 %v2490_v11  ;;  %v2142_v13 = vpop.f32.mrb[95].mxu1  ;;  %v2383_v15 = vmul.f32 %v5109_v23, %v2312_v7 }
 0x3c5   : > { %v2311_v16 = vmax.f32 %v2142_v13, 0.0  ;;  %2494 = vadd.xlane.f32.xlu1 %v2493_v14  ;;  %v2381_v19 = vmul.f32 %v5109_v23, %v2310_v9 }
 0x3c6   : > { %v2508_v17 = vsel %vm2417_vm4, %v2383_v15, 0.0  ;;  %v2384_v18 = vmul.f32 %v5109_v23, %v2313_v12 }
 0x3c7   : > { %v2382_v21 = vmul.f32 %v5109_v23, %v2311_v16  ;;  %v2502_v28 = vsel %vm2417_vm4, %v2381_v19, 0.0 }
 0x3c8   : > { %2509 = vadd.xlane.f32.xlu0 %v2508_v17  ;;  %v2511_v20 = vsel %vm2417_vm4, %v2384_v18, 0.0 }
 0x3c9   : > { %2512 = vadd.xlane.f32.xlu1 %v2511_v20  ;;  %v4244_v22 = vpop.f32.mrb[96].mxu1  ;;  %v2505_v31 = vsel %vm2417_vm4, %v2382_v21, 0.0 }
 0x3ca   : > { %v2316_v24 = vmax.f32 %v4244_v22, 0.0  ;;  %v2155_v25 = vpop.f32.mrb[97].mxu1 }
 0x3cb   : > { %v2314_v26 = vmax.f32 %v2155_v25, 0.0  ;;  %v4245_v27 = vpop.f32.mrb[98].mxu1 }
 0x3cc   : > { %v2317_v29 = vmax.f32 %v4245_v27, 0.0  ;;  %2503 = vadd.xlane.f32.xlu0 %v2502_v28  ;;  %v2158_v30 = vpop.f32.mrb[99].mxu1  ;;  %v2387_v32 = vmul.f32 %v5109_v23, %v2316_v24 }
 0x3cd   : > { %v2315_v33 = vmax.f32 %v2158_v30, 0.0  ;;  %2506 = vadd.xlane.f32.xlu1 %v2505_v31  ;;  %v2385_v36 = vmul.f32 %v5109_v23, %v2314_v26 }
 0x3ce   : > { %v2520_v34 = vsel %vm2417_vm4, %v2387_v32, 0.0  ;;  %v2388_v35 = vmul.f32 %v5109_v23, %v2317_v29 }
 0x3cf   : > { %v2386_v38 = vmul.f32 %v5109_v23, %v2315_v33  ;;  %v2514_v44 = vsel %vm2417_vm4, %v2385_v36, 0.0 }
 0x3d0   : > { %2521 = vadd.xlane.f32.xlu0 %v2520_v34  ;;  %v2523_v37 = vsel %vm2417_vm4, %v2388_v35, 0.0 }
 0x3d1   : > { %2524 = vadd.xlane.f32.xlu1 %v2523_v37  ;;  %v4248_v39 = vpop.f32.mrb[100].mxu1  ;;  %v2517_v47 = vsel %vm2417_vm4, %v2386_v38, 0.0 }
 0x3d2   : > { %v2320_v40 = vmax.f32 %v4248_v39, 0.0  ;;  %v2171_v41 = vpop.f32.mrb[101].mxu1 }
 0x3d3   : > { %v2318_v42 = vmax.f32 %v2171_v41, 0.0  ;;  %v4249_v43 = vpop.f32.mrb[102].mxu1 }
 0x3d4   : > { %v2321_v45 = vmax.f32 %v4249_v43, 0.0  ;;  %2515 = vadd.xlane.f32.xlu0 %v2514_v44  ;;  %v2174_v46 = vpop.f32.mrb[103].mxu1  ;;  %v2391_v48 = vmul.f32 %v5109_v23, %v2320_v40 }
 0x3d5   : > { %v2319_v49 = vmax.f32 %v2174_v46, 0.0  ;;  %2518 = vadd.xlane.f32.xlu1 %v2517_v47  ;;  %v2389_v52 = vmul.f32 %v5109_v23, %v2318_v42 }
 0x3d6   : > { %v2532_v50 = vsel %vm2417_vm4, %v2391_v48, 0.0  ;;  %v2392_v51 = vmul.f32 %v5109_v23, %v2321_v45 }
 0x3d7   : > { %v2390_v54 = vmul.f32 %v5109_v23, %v2319_v49  ;;  %v2526_v60 = vsel %vm2417_vm4, %v2389_v52, 0.0 }
 0x3d8   : > { %2533 = vadd.xlane.f32.xlu0 %v2532_v50  ;;  %v2535_v53 = vsel %vm2417_vm4, %v2392_v51, 0.0 }
 0x3d9   : > { %2536 = vadd.xlane.f32.xlu1 %v2535_v53  ;;  %v4252_v55 = vpop.f32.mrb[104].mxu1  ;;  %v2529_v63 = vsel %vm2417_vm4, %v2390_v54, 0.0 }
 0x3da   : > { %v2324_v56 = vmax.f32 %v4252_v55, 0.0  ;;  %v2187_v57 = vpop.f32.mrb[105].mxu1 }
 0x3db   : > { %v2322_v58 = vmax.f32 %v2187_v57, 0.0  ;;  %v4253_v59 = vpop.f32.mrb[106].mxu1 }
 0x3dc   : > { %v2325_v61 = vmax.f32 %v4253_v59, 0.0  ;;  %2527 = vadd.xlane.f32.xlu0 %v2526_v60  ;;  %v2190_v62 = vpop.f32.mrb[107].mxu1  ;;  %v2395_v0 = vmul.f32 %v5109_v23, %v2324_v56 }
 0x3dd   : > { %v2323_v1 = vmax.f32 %v2190_v62, 0.0  ;;  %2530 = vadd.xlane.f32.xlu1 %v2529_v63  ;;  %v2393_v4 = vmul.f32 %v5109_v23, %v2322_v58 }
 0x3de   : > { %v2544_v2 = vsel %vm2417_vm4, %v2395_v0, 0.0  ;;  %v2396_v3 = vmul.f32 %v5109_v23, %v2325_v61 }
 0x3df   : > { %v2394_v6 = vmul.f32 %v5109_v23, %v2323_v1  ;;  %v2538_v12 = vsel %vm2417_vm4, %v2393_v4, 0.0 }
 0x3e0   : > { %2545 = vadd.xlane.f32.xlu0 %v2544_v2  ;;  %v2547_v5 = vsel %vm2417_vm4, %v2396_v3, 0.0 }
 0x3e1   : > { %2548 = vadd.xlane.f32.xlu1 %v2547_v5  ;;  %v4256_v7 = vpop.f32.mrb[108].mxu1  ;;  %v2541_v15 = vsel %vm2417_vm4, %v2394_v6, 0.0 }
 0x3e2   : > { %v2328_v8 = vmax.f32 %v4256_v7, 0.0  ;;  %v2203_v9 = vpop.f32.mrb[109].mxu1 }
 0x3e3   : > { %v2326_v10 = vmax.f32 %v2203_v9, 0.0  ;;  %v4257_v11 = vpop.f32.mrb[110].mxu1 }
 0x3e4   : > { %v2329_v13 = vmax.f32 %v4257_v11, 0.0  ;;  %2539 = vadd.xlane.f32.xlu0 %v2538_v12  ;;  %v2206_v14 = vpop.f32.mrb[111].mxu1  ;;  %v2399_v16 = vmul.f32 %v5109_v23, %v2328_v8 }
 0x3e5   : > { %v2327_v17 = vmax.f32 %v2206_v14, 0.0  ;;  %2542 = vadd.xlane.f32.xlu1 %v2541_v15  ;;  %v2397_v20 = vmul.f32 %v5109_v23, %v2326_v10 }
 0x3e6   : > { %v2556_v18 = vsel %vm2417_vm4, %v2399_v16, 0.0  ;;  %v2400_v19 = vmul.f32 %v5109_v23, %v2329_v13 }
 0x3e7   : > { %v2398_v22 = vmul.f32 %v5109_v23, %v2327_v17  ;;  %v2550_v29 = vsel %vm2417_vm4, %v2397_v20, 0.0 }
 0x3e8   : > { %2557 = vadd.xlane.f32.xlu0 %v2556_v18  ;;  %v2559_v21 = vsel %vm2417_vm4, %v2400_v19, 0.0 }
 0x3e9   : > { %2560 = vadd.xlane.f32.xlu1 %v2559_v21  ;;  %v4260_v24 = vpop.f32.mrb[112].mxu1  ;;  %v2553_v32 = vsel %vm2417_vm4, %v2398_v22, 0.0 }
 0x3ea   : > { %v2332_v25 = vmax.f32 %v4260_v24, 0.0  ;;  %v2219_v26 = vpop.f32.mrb[113].mxu1 }
 0x3eb   : > { %v2330_v27 = vmax.f32 %v2219_v26, 0.0  ;;  %v4261_v28 = vpop.f32.mrb[114].mxu1 }
 0x3ec   : > { %v2333_v30 = vmax.f32 %v4261_v28, 0.0  ;;  %2551 = vadd.xlane.f32.xlu0 %v2550_v29  ;;  %v2222_v31 = vpop.f32.mrb[115].mxu1  ;;  %v2403_v33 = vmul.f32 %v5109_v23, %v2332_v25 }
 0x3ed   : > { %v2331_v34 = vmax.f32 %v2222_v31, 0.0  ;;  %2554 = vadd.xlane.f32.xlu1 %v2553_v32  ;;  %v2401_v37 = vmul.f32 %v5109_v23, %v2330_v27 }
 0x3ee   : > { %v2568_v35 = vsel %vm2417_vm4, %v2403_v33, 0.0  ;;  %v2404_v36 = vmul.f32 %v5109_v23, %v2333_v30 }
 0x3ef   : > { %v2402_v39 = vmul.f32 %v5109_v23, %v2331_v34  ;;  %v2562_v45 = vsel %vm2417_vm4, %v2401_v37, 0.0 }
 0x3f0   : > { %2569 = vadd.xlane.f32.xlu0 %v2568_v35  ;;  %v2571_v38 = vsel %vm2417_vm4, %v2404_v36, 0.0 }
 0x3f1   : > { %2572 = vadd.xlane.f32.xlu1 %v2571_v38  ;;  %v4264_v40 = vpop.f32.mrb[116].mxu1  ;;  %v2565_v48 = vsel %vm2417_vm4, %v2402_v39, 0.0 }
 0x3f2   : > { %v2336_v41 = vmax.f32 %v4264_v40, 0.0  ;;  %v2235_v42 = vpop.f32.mrb[117].mxu1 }
 0x3f3   : > { %v2334_v43 = vmax.f32 %v2235_v42, 0.0  ;;  %v4265_v44 = vpop.f32.mrb[118].mxu1 }
 0x3f4   : > { %v2337_v46 = vmax.f32 %v4265_v44, 0.0  ;;  %2563 = vadd.xlane.f32.xlu0 %v2562_v45  ;;  %v2238_v47 = vpop.f32.mrb[119].mxu1  ;;  %v2407_v49 = vmul.f32 %v5109_v23, %v2336_v41 }
 0x3f5   : > { %v2335_v50 = vmax.f32 %v2238_v47, 0.0  ;;  %2566 = vadd.xlane.f32.xlu1 %v2565_v48  ;;  %v2405_v53 = vmul.f32 %v5109_v23, %v2334_v43 }
 0x3f6   : > { %v2580_v51 = vsel %vm2417_vm4, %v2407_v49, 0.0  ;;  %v2408_v52 = vmul.f32 %v5109_v23, %v2337_v46 }
 0x3f7   : > { %v2406_v55 = vmul.f32 %v5109_v23, %v2335_v50  ;;  %v2574_v61 = vsel %vm2417_vm4, %v2405_v53, 0.0 }
 0x3f8   : > { %2581 = vadd.xlane.f32.xlu0 %v2580_v51  ;;  %v2583_v54 = vsel %vm2417_vm4, %v2408_v52, 0.0 }
 0x3f9   : > { %2584 = vadd.xlane.f32.xlu1 %v2583_v54  ;;  %v4268_v56 = vpop.f32.mrb[120].mxu1  ;;  %v2577_v0 = vsel %vm2417_vm4, %v2406_v55, 0.0 }
 0x3fa   : > { %v2340_v57 = vmax.f32 %v4268_v56, 0.0  ;;  %v2251_v58 = vpop.f32.mrb[121].mxu1 }
 0x3fb   : > { %v2338_v59 = vmax.f32 %v2251_v58, 0.0  ;;  %v4269_v60 = vpop.f32.mrb[122].mxu1 }
 0x3fc   : > { %v2341_v62 = vmax.f32 %v4269_v60, 0.0  ;;  %2575 = vadd.xlane.f32.xlu0 %v2574_v61  ;;  %v2254_v63 = vpop.f32.mrb[123].mxu1  ;;  %v2411_v1 = vmul.f32 %v5109_v23, %v2340_v57  ;;  %v5242_v61 = vld [vmem:[%s5457_s6] ss:$0 sm:$0xff] }
 0x3fd   : > { %v2339_v2 = vmax.f32 %v2254_v63, 0.0  ;;  %2578 = vadd.xlane.f32.xlu1 %v2577_v0  ;;  %v2409_v5 = vmul.f32 %v5109_v23, %v2338_v59 }
 0x3fe   : > { %v2592_v3 = vsel %vm2417_vm4, %v2411_v1, 0.0  ;;  %v2412_v4 = vmul.f32 %v5109_v23, %v2341_v62 }
 0x3ff   : > { %v2410_v7 = vmul.f32 %v5109_v23, %v2339_v2  ;;  %v2586_v13 = vsel %vm2417_vm4, %v2409_v5, 0.0 }
 0x400   : > { %2593 = vadd.xlane.f32.xlu0 %v2592_v3  ;;  %v2595_v6 = vsel %vm2417_vm4, %v2412_v4, 0.0 }
 0x401   : > { %2596 = vadd.xlane.f32.xlu1 %v2595_v6  ;;  %v4272_v8 = vpop.f32.mrb[124].mxu1  ;;  %v2589_v15 = vsel %vm2417_vm4, %v2410_v7, 0.0 }
 0x402   : > { %v2267_v9 = vpop.f32.mrb[125].mxu1  ;;  %v2344_v10 = vmax.f32 %v4272_v8, 0.0 }
 0x403   : > { %v2342_v11 = vmax.f32 %v2267_v9, 0.0  ;;  %v4273_v12 = vpop.f32.mrb[126].mxu1 }
 0x404   : > { %2587 = vadd.xlane.f32.xlu0 %v2586_v13  ;;  %v2270_v14 = vpop.f32.mrb[127].mxu1  ;;  %v2345_v16 = vmax.f32 %v4273_v12, 0.0  ;;  %v2415_v21 = vmul.f32 %v5109_v23, %v2344_v10 }
 0x405   : > { %v2343_v17 = vmax.f32 %v2270_v14, 0.0  ;;  %2590 = vadd.xlane.f32.xlu1 %v2589_v15  ;;  %v2413_v18 = vmul.f32 %v5109_v23, %v2342_v11 }
 0x406   : > { %v2416_v24 = vmul.f32 %v5109_v23, %v2345_v16  ;;  %v2604_v25 = vsel %vm2417_vm4, %v2415_v21, 0.0 }
 0x407   : > { %v2414_v19 = vmul.f32 %v5109_v23, %v2343_v17  ;;  %v2598_v20 = vsel %vm2417_vm4, %v2413_v18, 0.0 }
 0x408   : > { %2599 = vadd.xlane.f32.xlu0 %v2598_v20  ;;  %v2607_v26 = vsel %vm2417_vm4, %v2416_v24, 0.0 }
 0x409   : > { %v2601_v22 = vsel %vm2417_vm4, %v2414_v19, 0.0 }
 0x40a   : > { %2602 = vadd.xlane.f32.xlu1 %v2601_v22 }
 0x40c   : > { %2605 = vadd.xlane.f32.xlu0 %v2604_v25 }
 0x40e   : > { %2608 = vadd.xlane.f32.xlu1 %v2607_v26 }
 0x41c   : > { %v2426_v27 = vpop.xlane.xlu1 %2425 }
 0x41d   : > { %v3698_v28 = vmul.f32 -1.442695, %v2426_v27  ;;  %v2420_v29 = vpop.xlane.xlu0 %2419 }
 0x41e   : > { %v3696_v30 = vmul.f32 -1.442695, %v2420_v29 }
 0x41f   : > { %4304 = vpow2.f32 %v3698_v28 }
 0x420   : > { %4306 = vpow2.f32 %v3696_v30  ;;  %v2429_v31 = vpop.xlane.xlu1 %2428 }
 0x421   : > { %v3699_v32 = vmul.f32 -1.442695, %v2429_v31  ;;  %v2423_v33 = vpop.xlane.xlu0 %2422 }
 0x422   : > { %v3697_v34 = vmul.f32 -1.442695, %v2423_v33 }
 0x423   : > { %4308 = vpow2.f32 %v3699_v32 }
 0x424   : > { %4310 = vpow2.f32 %v3697_v34 }
 0x425   : > { %v2438_v23 = vpop.xlane.xlu0 %2437 }
 0x426   : > { %v3702_v35 = vmul.f32 -1.442695, %v2438_v23  ;;  %v2441_v36 = vpop.xlane.xlu1 %2440 }
 0x427   : > { %v3703_v37 = vmul.f32 -1.442695, %v2441_v36 }
 0x428   : > { %4312 = vpow2.f32 %v3702_v35 }
 0x429   : > { %v4305_v38 = vpop.eup %4304  ;;  %4314 = vpow2.f32 %v3703_v37  ;;  %v2432_v39 = vpop.xlane.xlu0 %2431 }
 0x42a   : > { %v4307_v40 = vpop.eup %4306  ;;  %v2804_v41 = vadd.f32 1.0, %v4305_v38  ;;  %v3700_v42 = vmul.f32 -1.442695, %v2432_v39  ;;  %v2435_v43 = vpop.xlane.xlu1 %2434 }
 0x42b   : > { %v2802_v44 = vadd.f32 1.0, %v4307_v40  ;;  %v3701_v45 = vmul.f32 -1.442695, %v2435_v43 }
 0x42c   : > { %4316 = vrcp.f32 %v2804_v41 }
 0x42d   : > { %v4309_v46 = vpop.eup %4308  ;;  %4318 = vrcp.f32 %v2802_v44  ;;  %v2450_v47 = vpop.xlane.xlu0 %2449 }
 0x42e   : > { %v4311_v48 = vpop.eup %4310  ;;  %v2805_v49 = vadd.f32 1.0, %v4309_v46  ;;  %4320 = vpow2.f32 %v3700_v42  ;;  %v3706_v50 = vmul.f32 -1.442695, %v2450_v47  ;;  %v2453_v51 = vpop.xlane.xlu1 %2452 }
 0x42f   : > { %v2803_v52 = vadd.f32 1.0, %v4311_v48  ;;  %4322 = vpow2.f32 %v3701_v45  ;;  %v3707_v53 = vmul.f32 -1.442695, %v2453_v51 }
 0x430   : > { %4324 = vrcp.f32 %v2805_v49 }
 0x431   : > { %4326 = vrcp.f32 %v2803_v52  ;;  %v2444_v54 = vpop.xlane.xlu0 %2443 }
 0x432   : > { %v4313_v55 = vpop.eup %4312  ;;  %4328 = vpow2.f32 %v3706_v50  ;;  %v3704_v56 = vmul.f32 -1.442695, %v2444_v54  ;;  %v2447_v57 = vpop.xlane.xlu1 %2446 }
 0x433   : > { %v4315_v58 = vpop.eup %4314  ;;  %v2808_v59 = vadd.f32 1.0, %v4313_v55  ;;  %4330 = vpow2.f32 %v3707_v53  ;;  %v3705_v60 = vmul.f32 -1.442695, %v2447_v57 }
 0x434   : > { %v2809_v62 = vadd.f32 1.0, %v4315_v58  ;;  %4332 = vpow2.f32 %v3704_v56 }
 0x435   : > { %4334 = vrcp.f32 %v2808_v59  ;;  %v2462_v63 = vpop.xlane.xlu0 %2461 }
 0x436   : > { %v4317_v0 = vpop.eup %4316  ;;  %4336 = vrcp.f32 %v2809_v62  ;;  %v3710_v1 = vmul.f32 -1.442695, %v2462_v63  ;;  %v2465_v2 = vpop.xlane.xlu1 %2464 }
 0x437   : > { %v4319_v3 = vpop.eup %4318  ;;  %v3003_v4 = vmul.f32 %v4317_v0, %v5242_v61  ;;  %4338 = vpow2.f32 %v3705_v60  ;;  %v3711_v5 = vmul.f32 -1.442695, %v2465_v2 }
 0x438   : > { %v4321_v6 = vpop.eup %4320  ;;  %v3001_v7 = vmul.f32 %v4319_v3, %v5242_v61  ;;  %4340 = vpow2.f32 %v3710_v1 }
 0x439   : > { %v4323_v8 = vpop.eup %4322  ;;  %v3763_v9 = vmul.f32 -1.442695, %v3003_v4  ;;  %v2806_v10 = vadd.f32 1.0, %v4321_v6  ;;  %4342 = vpow2.f32 %v3711_v5  ;;  %v2456_v36 = vpop.xlane.xlu0 %2455 }
 0x43a   : > { %v4325_v11 = vpop.eup %4324  ;;  %v3761_v12 = vmul.f32 -1.442695, %v3001_v7  ;;  %v2807_v13 = vadd.f32 1.0, %v4323_v8  ;;  %v3708_v43 = vmul.f32 -1.442695, %v2456_v36  ;;  %v2459_v51 = vpop.xlane.xlu1 %2458 }
 0x43b   : > { %v4327_v14 = vpop.eup %4326  ;;  %4344 = vpow2.f32 %v3763_v9  ;;  %v3004_v15 = vmul.f32 %v4325_v11, %v5242_v61 }
 0x43c   : > { %v4329_v16 = vpop.eup %4328  ;;  %4346 = vpow2.f32 %v3761_v12  ;;  %v3002_v17 = vmul.f32 %v4327_v14, %v5242_v61  ;;  %v3709_v14 = vmul.f32 -1.442695, %v2459_v51 }
 0x43d   : > { %v4331_v18 = vpop.eup %4330  ;;  %v3764_v19 = vmul.f32 -1.442695, %v3004_v15  ;;  %4348 = vrcp.f32 %v2806_v10  ;;  %v2812_v20 = vadd.f32 1.0, %v4329_v16  ;;  %v2474_v57 = vpop.xlane.xlu0 %2473 }
 0x43e   : > { %v4333_v21 = vpop.eup %4332  ;;  %v3762_v22 = vmul.f32 -1.442695, %v3002_v17  ;;  %4350 = vrcp.f32 %v2807_v13  ;;  %v2813_v24 = vadd.f32 1.0, %v4331_v18  ;;  %v2477_v6 = vpop.xlane.xlu1 %2476 }
 0x43f   : > { %v4335_v25 = vpop.eup %4334  ;;  %4352 = vpow2.f32 %v3764_v19  ;;  %v2810_v26 = vadd.f32 1.0, %v4333_v21  ;;  %v3714_v21 = vmul.f32 -1.442695, %v2474_v57 }
 0x440   : > { %v4337_v27 = vpop.eup %4336  ;;  %4354 = vpow2.f32 %v3762_v22  ;;  %v3007_v28 = vmul.f32 %v4335_v25, %v5242_v61 }
 0x441   : > { %v4339_v29 = vpop.eup %4338  ;;  %v3008_v30 = vmul.f32 %v4337_v27, %v5242_v61  ;;  %4356 = vrcp.f32 %v2812_v20  ;;  %v2468_v11 = vpop.xlane.xlu0 %2467 }
 0x442   : > { %v4341_v31 = vpop.eup %4340  ;;  %v3767_v32 = vmul.f32 -1.442695, %v3007_v28  ;;  %4358 = vrcp.f32 %v2813_v24  ;;  %v2811_v33 = vadd.f32 1.0, %v4339_v29  ;;  %v2471_v22 = vpop.xlane.xlu1 %2470 }
 0x443   : > { %v4343_v34 = vpop.eup %4342  ;;  %v3768_v23 = vmul.f32 -1.442695, %v3008_v30  ;;  %4360 = vrcp.f32 %v2810_v26  ;;  %v2816_v35 = vadd.f32 1.0, %v4341_v31 }
 0x444   : > { %4362 = vpow2.f32 %v3767_v32  ;;  %v2817_v40 = vadd.f32 1.0, %v4343_v34  ;;  %v3715_v32 = vmul.f32 -1.442695, %v2477_v6 }
 0x445   : > { %v4345_v37 = vpop.eup %4344  ;;  %4364 = vpow2.f32 %v3768_v23  ;;  %v2486_v27 = vpop.xlane.xlu0 %2485  ;;  %v3712_v23 = vmul.f32 -1.442695, %v2468_v11 }
 0x446   : > { %v4347_v38 = vpop.eup %4346  ;;  %v3259_v39 = vadd.f32 1.0, %v4345_v37  ;;  %4366 = vrcp.f32 %v2811_v33  ;;  %v2489_v36 = vpop.xlane.xlu1 %2488 }
 0x447   : > { %v4349_v41 = vpop.eup %4348  ;;  %v3257_v42 = vadd.f32 1.0, %v4347_v38  ;;  %4368 = vrcp.f32 %v2816_v35 }
 0x448   : > { %v4351_v44 = vpop.eup %4350  ;;  %4370 = vrcp.f32 %v3259_v39  ;;  %v3005_v45 = vmul.f32 %v4349_v41, %v5242_v61 }
 0x449   : > { %v4353_v46 = vpop.eup %4352  ;;  %4372 = vrcp.f32 %v3257_v42  ;;  %v3006_v47 = vmul.f32 %v4351_v44, %v5242_v61 }
 0x44a   : > { %v4355_v48 = vpop.eup %4354  ;;  %v3260_v49 = vadd.f32 1.0, %v4353_v46  ;;  %v3765_v50 = vmul.f32 -1.442695, %v3005_v45  ;;  %4374 = vrcp.f32 %v2817_v40  ;;  %v2480_v40 = vpop.xlane.xlu0 %2479 }
 0x44b   : > { %v4357_v52 = vpop.eup %4356  ;;  %v3258_v53 = vadd.f32 1.0, %v4355_v48  ;;  %v3766_v54 = vmul.f32 -1.442695, %v3006_v47  ;;  %4376 = vpow2.f32 %v3708_v43  ;;  %v3713_v47 = vmul.f32 -1.442695, %v2471_v22 }
 0x44c   : > { %v4359_v55 = vpop.eup %4358  ;;  %4378 = vrcp.f32 %v3260_v49  ;;  %v3011_v56 = vmul.f32 %v4357_v52, %v5242_v61 }
 0x44d   : > { %v4361_v58 = vpop.eup %4360  ;;  %4380 = vrcp.f32 %v3258_v53  ;;  %v3012_v59 = vmul.f32 %v4359_v55, %v5242_v61 }
 0x44e   : > { %v4363_v60 = vpop.eup %4362  ;;  %4382 = vpow2.f32 %v3765_v50  ;;  %v3771_v62 = vmul.f32 -1.442695, %v3011_v56  ;;  %v3009_v63 = vmul.f32 %v4361_v58, %v5242_v61  ;;  %v2483_v50 = vpop.xlane.xlu1 %2482 }
 0x44f   : > { %v4365_v0 = vpop.eup %4364  ;;  %v3263_v1 = vadd.f32 1.0, %v4363_v60  ;;  %4384 = vpow2.f32 %v3766_v54  ;;  %v3772_v2 = vmul.f32 -1.442695, %v3012_v59  ;;  %v2498_v55 = vpop.xlane.xlu0 %2497  ;;  %v3718_v59 = vmul.f32 -1.442695, %v2486_v27 }
 0x450   : > { %v4367_v3 = vpop.eup %4366  ;;  %v3264_v4 = vadd.f32 1.0, %v4365_v0  ;;  %4386 = vpow2.f32 %v3771_v62  ;;  %v3769_v5 = vmul.f32 -1.442695, %v3009_v63  ;;  %v3719_v62 = vmul.f32 -1.442695, %v2489_v36 }
 0x451   : > { %v4369_v7 = vpop.eup %4368  ;;  %4388 = vrcp.f32 %v3263_v1  ;;  %v3010_v8 = vmul.f32 %v4367_v3, %v5242_v61 }
 0x452   : > { %v4371_v9 = vpop.eup %4370  ;;  %4390 = vrcp.f32 %v3264_v4  ;;  %v3015_v10 = vmul.f32 %v4369_v7, %v5242_v61  ;;  %v2501_v1 = vpop.xlane.xlu1 %2500  ;;  %v3716_v4 = vmul.f32 -1.442695, %v2480_v40  ;;  %v3717_v7 = vmul.f32 -1.442695, %v2483_v50 }
 0x453   : > { %v4373_v12 = vpop.eup %4372  ;;  %3451 = vst.msk [vmem:[%s5260_s17 + $0x10] sm:$0xff] %vm1896_vm3, %v4371_v9  ;;  %4392 = vpow2.f32 %v3772_v2  ;;  %v3770_v13 = vmul.f32 -1.442695, %v3010_v8  ;;  %v2492_v8 = vpop.xlane.xlu0 %2491 }
 0x454   : > { %v4375_v15 = vpop.eup %4374  ;;  %3449 = vst.msk [vmem:[%s5260_s17] sm:$0xff] %vm1896_vm3, %v4373_v12  ;;  %4394 = vpow2.f32 %v3769_v5  ;;  %v3775_v16 = vmul.f32 -1.442695, %v3015_v10  ;;  %v3722_v10 = vmul.f32 -1.442695, %v2498_v55 }
 0x455   : > { %v4377_v17 = vpop.eup %4376  ;;  %4396 = vpow2.f32 %v3770_v13  ;;  %v3016_v18 = vmul.f32 %v4375_v15, %v5242_v61  ;;  %v3723_v12 = vmul.f32 -1.442695, %v2501_v1 }
 0x456   : > { %v4379_v19 = vpop.eup %4378  ;;  %4398 = vpow2.f32 %v3775_v16  ;;  %v2814_v20 = vadd.f32 1.0, %v4377_v17  ;;  %v2495_v16 = vpop.xlane.xlu1 %2494 }
 0x457   : > { %v4381_v24 = vpop.eup %4380  ;;  %3452 = vst.msk [vmem:[%s5260_s17 + $0x18] sm:$0xff] %vm1896_vm3, %v4379_v19  ;;  %v3776_v25 = vmul.f32 -1.442695, %v3016_v18  ;;  %4400 = vpow2.f32 %v3709_v14  ;;  %v3720_v14 = vmul.f32 -1.442695, %v2492_v8  ;;  %v2510_v27 = vpop.xlane.xlu0 %2509 }
 0x458   : > { %v4383_v26 = vpop.eup %4382  ;;  %3450 = vst.msk [vmem:[%s5260_s17 + $0x8] sm:$0xff] %vm1896_vm3, %v4381_v24  ;;  %4402 = vrcp.f32 %v2814_v20  ;;  %v3721_v24 = vmul.f32 -1.442695, %v2495_v16 }
 0x459   : > { %v4385_v28 = vpop.eup %4384  ;;  %v3261_v29 = vadd.f32 1.0, %v4383_v26  ;;  %4404 = vpow2.f32 %v3776_v25 }
 0x45a   : > { %v4387_v30 = vpop.eup %4386  ;;  %v3262_v31 = vadd.f32 1.0, %v4385_v28  ;;  %4406 = vpow2.f32 %v3714_v21 }
 0x45b   : > { %v4389_v33 = vpop.eup %4388  ;;  %4408 = vrcp.f32 %v3261_v29  ;;  %v3267_v34 = vadd.f32 1.0, %v4387_v30 }
 0x45c   : > { %v4391_v35 = vpop.eup %4390  ;;  %3455 = vst.msk [vmem:[%s5260_s17 + $0x30] sm:$0xff] %vm1896_vm3, %v4389_v33  ;;  %4410 = vrcp.f32 %v3262_v31 }
 0x45d   : > { %v4393_v37 = vpop.eup %4392  ;;  %3456 = vst.msk [vmem:[%s5260_s17 + $0x38] sm:$0xff] %vm1896_vm3, %v4391_v35  ;;  %4412 = vrcp.f32 %v3267_v34 }
 0x45e   : > { %v4395_v38 = vpop.eup %4394  ;;  %v3268_v39 = vadd.f32 1.0, %v4393_v37  ;;  %4414 = vpow2.f32 %v3715_v32 }
 0x45f   : > { %v4397_v41 = vpop.eup %4396  ;;  %v3265_v42 = vadd.f32 1.0, %v4395_v38  ;;  %4416 = vpow2.f32 %v3712_v23  ;;  %v3726_v23 = vmul.f32 -1.442695, %v2510_v27 }
 0x460   : > { %v4399_v43 = vpop.eup %4398  ;;  %4418 = vrcp.f32 %v3268_v39  ;;  %v3266_v44 = vadd.f32 1.0, %v4397_v41 }
 0x461   : > { %v4401_v45 = vpop.eup %4400  ;;  %4420 = vrcp.f32 %v3265_v42  ;;  %v3271_v46 = vadd.f32 1.0, %v4399_v43 }
 0x462   : > { %v4403_v48 = vpop.eup %4402  ;;  %4422 = vrcp.f32 %v3266_v44  ;;  %v2815_v49 = vadd.f32 1.0, %v4401_v45 }
 0x463   : > { %v4405_v51 = vpop.eup %4404  ;;  %4424 = vrcp.f32 %v3271_v46  ;;  %v3013_v52 = vmul.f32 %v4403_v48, %v5242_v61 }
 0x464   : > { %v4407_v53 = vpop.eup %4406  ;;  %v3272_v54 = vadd.f32 1.0, %v4405_v51  ;;  %4426 = vrcp.f32 %v2815_v49 }
 0x465   : > { %v4409_v56 = vpop.eup %4408  ;;  %v3773_v57 = vmul.f32 -1.442695, %v3013_v52  ;;  %v2820_v58 = vadd.f32 1.0, %v4407_v53  ;;  %4428 = vpow2.f32 %v3713_v47 }
 0x466   : > { %v4411_v60 = vpop.eup %4410  ;;  %3453 = vst.msk [vmem:[%s5260_s17 + $0x20] sm:$0xff] %vm1896_vm3, %v4409_v56  ;;  %4430 = vrcp.f32 %v3272_v54 }
 0x467   : > { %v4413_v63 = vpop.eup %4412  ;;  %3454 = vst.msk [vmem:[%s5260_s17 + $0x28] sm:$0xff] %vm1896_vm3, %v4411_v60  ;;  %4432 = vpow2.f32 %v3773_v57 }
 0x468   : > { %v4415_v0 = vpop.eup %4414  ;;  %3459 = vst.msk [vmem:[%s5260_s17 + $0x50] sm:$0xff] %vm1896_vm3, %v4413_v63  ;;  %4434 = vrcp.f32 %v2820_v58 }
 0x469   : > { %v4417_v2 = vpop.eup %4416  ;;  %v2821_v3 = vadd.f32 1.0, %v4415_v0  ;;  %4436 = vpow2.f32 %v3718_v59 }
 0x46a   : > { %v4419_v5 = vpop.eup %4418  ;;  %v2818_v6 = vadd.f32 1.0, %v4417_v2  ;;  %4438 = vpow2.f32 %v3719_v62 }
 0x46b   : > { %v4421_v9 = vpop.eup %4420  ;;  %3460 = vst.msk [vmem:[%s5260_s17 + $0x58] sm:$0xff] %vm1896_vm3, %v4419_v5  ;;  %4440 = vrcp.f32 %v2821_v3  ;;  %v2513_v3 = vpop.xlane.xlu1 %2512 }
 0x46c   : > { %v4423_v11 = vpop.eup %4422  ;;  %3457 = vst.msk [vmem:[%s5260_s17 + $0x40] sm:$0xff] %vm1896_vm3, %v4421_v9  ;;  %4442 = vrcp.f32 %v2818_v6  ;;  %v2504_v6 = vpop.xlane.xlu0 %2503 }
 0x46d   : > { %v4425_v13 = vpop.eup %4424  ;;  %3458 = vst.msk [vmem:[%s5260_s17 + $0x48] sm:$0xff] %vm1896_vm3, %v4423_v11  ;;  %4444 = vpow2.f32 %v3716_v4 }
 0x46e   : > { %v4427_v15 = vpop.eup %4426  ;;  %3463 = vst.msk [vmem:[%s5260_s17 + $0x70] sm:$0xff] %vm1896_vm3, %v4425_v13  ;;  %4446 = vpow2.f32 %v3717_v7 }
 0x46f   : > { %v4429_v17 = vpop.eup %4428  ;;  %v3014_v18 = vmul.f32 %v4427_v15, %v5242_v61  ;;  %4448 = vpow2.f32 %v3722_v10 }
 0x470   : > { %v4431_v19 = vpop.eup %4430  ;;  %v2819_v20 = vadd.f32 1.0, %v4429_v17  ;;  %4450 = vpow2.f32 %v3723_v12  ;;  %v3727_v12 = vmul.f32 -1.442695, %v2513_v3 }
 0x471   : > { %v4433_v21 = vpop.eup %4432  ;;  %3464 = vst.msk [vmem:[%s5260_s17 + $0x78] sm:$0xff] %vm1896_vm3, %v4431_v19  ;;  %v3774_v22 = vmul.f32 -1.442695, %v3014_v18  ;;  %4452 = vpow2.f32 %v3720_v14 }
 0x472   : > { %v4435_v25 = vpop.eup %4434  ;;  %v3269_v26 = vadd.f32 1.0, %v4433_v21  ;;  %4454 = vrcp.f32 %v2819_v20  ;;  %v2507_v20 = vpop.xlane.xlu1 %2506 }
 0x473   : > { %v4437_v28 = vpop.eup %4436  ;;  %4456 = vpow2.f32 %v3774_v22  ;;  %v3019_v29 = vmul.f32 %v4435_v25, %v5242_v61  ;;  %v2522_v25 = vpop.xlane.xlu0 %2521 }
 0x474   : > { %v4439_v30 = vpop.eup %4438  ;;  %4458 = vrcp.f32 %v3269_v26  ;;  %v2824_v31 = vadd.f32 1.0, %v4437_v28 }
 0x475   : > { %v4441_v32 = vpop.eup %4440  ;;  %v3779_v33 = vmul.f32 -1.442695, %v3019_v29  ;;  %v2825_v34 = vadd.f32 1.0, %v4439_v30  ;;  %4460 = vpow2.f32 %v3721_v24 }
 0x476   : > { %v4443_v35 = vpop.eup %4442  ;;  %v3020_v36 = vmul.f32 %v4441_v32, %v5242_v61  ;;  %4462 = vrcp.f32 %v2824_v31  ;;  %v3724_v31 = vmul.f32 -1.442695, %v2504_v6 }
 0x477   : > { %v4445_v37 = vpop.eup %4444  ;;  %4464 = vpow2.f32 %v3779_v33  ;;  %v3017_v38 = vmul.f32 %v4443_v35, %v5242_v61 }
 0x478   : > { %v4447_v39 = vpop.eup %4446  ;;  %v3780_v40 = vmul.f32 -1.442695, %v3020_v36  ;;  %4466 = vrcp.f32 %v2825_v34  ;;  %v2822_v41 = vadd.f32 1.0, %v4445_v37  ;;  %v2525_v37 = vpop.xlane.xlu1 %2524 }
 0x479   : > { %v4449_v42 = vpop.eup %4448  ;;  %v3777_v43 = vmul.f32 -1.442695, %v3017_v38  ;;  %v2823_v44 = vadd.f32 1.0, %v4447_v39  ;;  %4468 = vpow2.f32 %v3726_v23  ;;  %v3731_v3 = vmul.f32 -1.442695, %v2525_v37 }
 0x47a   : > { %v4451_v45 = vpop.eup %4450  ;;  %4470 = vpow2.f32 %v3780_v40  ;;  %v2828_v46 = vadd.f32 1.0, %v4449_v42  ;;  %v2516_v42 = vpop.xlane.xlu0 %2515 }
 0x47b   : > { %v4453_v47 = vpop.eup %4452  ;;  %4472 = vpow2.f32 %v3777_v43  ;;  %v2829_v48 = vadd.f32 1.0, %v4451_v45 }
 0x47c   : > { %v4455_v49 = vpop.eup %4454  ;;  %4474 = vrcp.f32 %v2822_v41  ;;  %v2826_v54 = vadd.f32 1.0, %v4453_v47  ;;  %v3725_v41 = vmul.f32 -1.442695, %v2507_v20 }
 0x47d   : > { %v4457_v50 = vpop.eup %4456  ;;  %v3018_v51 = vmul.f32 %v4455_v49, %v5242_v61  ;;  %4476 = vrcp.f32 %v2823_v44 }
 0x47e   : > { %v4459_v52 = vpop.eup %4458  ;;  %v3270_v53 = vadd.f32 1.0, %v4457_v50  ;;  %4478 = vrcp.f32 %v2828_v46 }
 0x47f   : > { %v4461_v55 = vpop.eup %4460  ;;  %3461 = vst.msk [vmem:[%s5260_s17 + $0x60] sm:$0xff] %vm1896_vm3, %v4459_v52  ;;  %v3778_v56 = vmul.f32 -1.442695, %v3018_v51  ;;  %4480 = vrcp.f32 %v2829_v48  ;;  %v2519_v52 = vpop.xlane.xlu1 %2518 }
 0x480   : > { %v4463_v57 = vpop.eup %4462  ;;  %4482 = vrcp.f32 %v3270_v53  ;;  %v2827_v58 = vadd.f32 1.0, %v4461_v55  ;;  %v2534_v55 = vpop.xlane.xlu0 %2533 }
 0x481   : > { %v4465_v59 = vpop.eup %4464  ;;  %4484 = vpow2.f32 %v3778_v56  ;;  %v3023_v60 = vmul.f32 %v4463_v57, %v5242_v61 }
 0x482   : > { %v4467_v62 = vpop.eup %4466  ;;  %v3275_v63 = vadd.f32 1.0, %v4465_v59  ;;  %4486 = vrcp.f32 %v2826_v54 }
 0x483   : > { %v4469_v0 = vpop.eup %4468  ;;  %v3783_v1 = vmul.f32 -1.442695, %v3023_v60  ;;  %v3024_v2 = vmul.f32 %v4467_v62, %v5242_v61  ;;  %4488 = vrcp.f32 %v2827_v58  ;;  %v3730_v58 = vmul.f32 -1.442695, %v2522_v25 }
 0x484   : > { %v4471_v4 = vpop.eup %4470  ;;  %4490 = vrcp.f32 %v3275_v63  ;;  %v2832_v5 = vadd.f32 1.0, %v4469_v0 }
 0x485   : > { %v4473_v7 = vpop.eup %4472  ;;  %v3276_v8 = vadd.f32 1.0, %v4471_v4  ;;  %4492 = vpow2.f32 %v3783_v1  ;;  %v3784_v9 = vmul.f32 -1.442695, %v3024_v2  ;;  %v2537_v4 = vpop.xlane.xlu1 %2536 }
 0x486   : > { %v4475_v10 = vpop.eup %4474  ;;  %v3273_v11 = vadd.f32 1.0, %v4473_v7  ;;  %4494 = vrcp.f32 %v2832_v5  ;;  %v2528_v7 = vpop.xlane.xlu0 %2527  ;;  %v3735_v25 = vmul.f32 -1.442695, %v2537_v4 }
 0x487   : > { %v4477_v13 = vpop.eup %4476  ;;  %4496 = vrcp.f32 %v3276_v8  ;;  %v3021_v14 = vmul.f32 %v4475_v10, %v5242_v61 }
 0x488   : > { %v4479_v15 = vpop.eup %4478  ;;  %4498 = vrcp.f32 %v3273_v11  ;;  %v3022_v16 = vmul.f32 %v4477_v13, %v5242_v61  ;;  %v3728_v13 = vmul.f32 -1.442695, %v2516_v42 }
 0x489   : > { %v4481_v17 = vpop.eup %4480  ;;  %4500 = vpow2.f32 %v3784_v9  ;;  %v3781_v18 = vmul.f32 -1.442695, %v3021_v14  ;;  %v3027_v19 = vmul.f32 %v4479_v15, %v5242_v61 }
 0x48a   : > { %v4483_v21 = vpop.eup %4482  ;;  %v3782_v22 = vmul.f32 -1.442695, %v3022_v16  ;;  %v3028_v24 = vmul.f32 %v4481_v17, %v5242_v61  ;;  %4502 = vpow2.f32 %v3727_v12  ;;  %v3729_v16 = vmul.f32 -1.442695, %v2519_v52 }
 0x48b   : > { %v4485_v26 = vpop.eup %4484  ;;  %3462 = vst.msk [vmem:[%s5260_s17 + $0x68] sm:$0xff] %vm1896_vm3, %v4483_v21  ;;  %4504 = vpow2.f32 %v3781_v18  ;;  %v3787_v27 = vmul.f32 -1.442695, %v3027_v19  ;;  %v3734_v18 = vmul.f32 -1.442695, %v2534_v55  ;;  %v2531_v19 = vpop.xlane.xlu1 %2530 }
 0x48c   : > { %v4487_v28 = vpop.eup %4486  ;;  %v3274_v29 = vadd.f32 1.0, %v4485_v26  ;;  %4506 = vpow2.f32 %v3782_v22  ;;  %v3788_v30 = vmul.f32 -1.442695, %v3028_v24  ;;  %v2546_v22 = vpop.xlane.xlu0 %2545 }
 0x48d   : > { %v4489_v32 = vpop.eup %4488  ;;  %4508 = vpow2.f32 %v3787_v27  ;;  %v3025_v33 = vmul.f32 %v4487_v28, %v5242_v61 }
 0x48e   : > { %v4491_v34 = vpop.eup %4490  ;;  %4510 = vrcp.f32 %v3274_v29  ;;  %v3026_v23 = vmul.f32 %v4489_v32, %v5242_v61  ;;  %v3732_v29 = vmul.f32 -1.442695, %v2528_v7  ;;  %v3733_v32 = vmul.f32 -1.442695, %v2531_v19 }
 0x48f   : > { %v4493_v35 = vpop.eup %4492  ;;  %3467 = vst.msk [vmem:[%s5260_s17 + $0x90] sm:$0xff] %vm1896_vm3, %v4491_v34  ;;  %4512 = vpow2.f32 %v3788_v30  ;;  %v3785_v36 = vmul.f32 -1.442695, %v3025_v33  ;;  %v3738_v34 = vmul.f32 -1.442695, %v2546_v22 }
 0x490   : > { %v4495_v38 = vpop.eup %4494  ;;  %v3279_v39 = vadd.f32 1.0, %v4493_v35  ;;  %v3786_v40 = vmul.f32 -1.442695, %v3026_v23  ;;  %4514 = vpow2.f32 %v3724_v31  ;;  %v2549_v23 = vpop.xlane.xlu1 %2548 }
 0x491   : > { %v4497_v43 = vpop.eup %4496  ;;  %4516 = vpow2.f32 %v3785_v36  ;;  %v3031_v44 = vmul.f32 %v4495_v38, %v5242_v61  ;;  %v2540_v37 = vpop.xlane.xlu0 %2539  ;;  %v3739_v42 = vmul.f32 -1.442695, %v2549_v23 }
 0x492   : > { %v4499_v45 = vpop.eup %4498  ;;  %3468 = vst.msk [vmem:[%s5260_s17 + $0x98] sm:$0xff] %vm1896_vm3, %v4497_v43  ;;  %4518 = vrcp.f32 %v3279_v39 }
 0x493   : > { %v4501_v46 = vpop.eup %4500  ;;  %3465 = vst.msk [vmem:[%s5260_s17 + $0x80] sm:$0xff] %vm1896_vm3, %v4499_v45  ;;  %4520 = vpow2.f32 %v3786_v40  ;;  %v3791_v47 = vmul.f32 -1.442695, %v3031_v44  ;;  %v3736_v44 = vmul.f32 -1.442695, %v2540_v37 }
 0x494   : > { %v4503_v48 = vpop.eup %4502  ;;  %v3280_v49 = vadd.f32 1.0, %v4501_v46  ;;  %4522 = vpow2.f32 %v3725_v41 }
 0x495   : > { %v4505_v50 = vpop.eup %4504  ;;  %4524 = vpow2.f32 %v3791_v47  ;;  %v2833_v51 = vadd.f32 1.0, %v4503_v48 }
 0x496   : > { %v4507_v53 = vpop.eup %4506  ;;  %4526 = vrcp.f32 %v3280_v49  ;;  %v3277_v54 = vadd.f32 1.0, %v4505_v50 }
 0x497   : > { %v4509_v56 = vpop.eup %4508  ;;  %v3278_v57 = vadd.f32 1.0, %v4507_v53  ;;  %4528 = vrcp.f32 %v2833_v51 }
 0x498   : > { %v4511_v59 = vpop.eup %4510  ;;  %4530 = vrcp.f32 %v3277_v54  ;;  %v3283_v60 = vadd.f32 1.0, %v4509_v56 }
 0x499   : > { %v4513_v62 = vpop.eup %4512  ;;  %3466 = vst.msk [vmem:[%s5260_s17 + $0x88] sm:$0xff] %vm1896_vm3, %v4511_v59  ;;  %4532 = vrcp.f32 %v3278_v57 }
 0x49a   : > { %v4515_v63 = vpop.eup %4514  ;;  %4534 = vrcp.f32 %v3283_v60  ;;  %v3284_v0 = vadd.f32 1.0, %v4513_v62 }
 0x49b   : > { %v4517_v1 = vpop.eup %4516  ;;  %v2830_v2 = vadd.f32 1.0, %v4515_v63  ;;  %4536 = vpow2.f32 %v3730_v58 }
 0x49c   : > { %v4519_v5 = vpop.eup %4518  ;;  %4538 = vrcp.f32 %v3284_v0  ;;  %v3281_v6 = vadd.f32 1.0, %v4517_v1 }
 0x49d   : > { %v4521_v8 = vpop.eup %4520  ;;  %3471 = vst.msk [vmem:[%s5260_s17 + $0xb0] sm:$0xff] %vm1896_vm3, %v4519_v5  ;;  %4540 = vrcp.f32 %v2830_v2 }
 0x49e   : > { %v4523_v9 = vpop.eup %4522  ;;  %4542 = vrcp.f32 %v3281_v6  ;;  %v3282_v10 = vadd.f32 1.0, %v4521_v8 }
 0x49f   : > { %v4525_v11 = vpop.eup %4524  ;;  %v2831_v12 = vadd.f32 1.0, %v4523_v9  ;;  %4544 = vpow2.f32 %v3731_v3  ;;  %v2543_v9 = vpop.xlane.xlu1 %2542 }
 0x4a0   : > { %v4527_v14 = vpop.eup %4526  ;;  %4546 = vrcp.f32 %v3282_v10  ;;  %v3287_v15 = vadd.f32 1.0, %v4525_v11 }
 0x4a1   : > { %v4529_v17 = vpop.eup %4528  ;;  %3472 = vst.msk [vmem:[%s5260_s17 + $0xb8] sm:$0xff] %vm1896_vm3, %v4527_v14  ;;  %4548 = vrcp.f32 %v2831_v12 }
 0x4a2   : > { %v4531_v20 = vpop.eup %4530  ;;  %4550 = vrcp.f32 %v3287_v15  ;;  %v3032_v21 = vmul.f32 %v4529_v17, %v5242_v61  ;;  %v3737_v17 = vmul.f32 -1.442695, %v2543_v9 }
 0x4a3   : > { %v4533_v24 = vpop.eup %4532  ;;  %3469 = vst.msk [vmem:[%s5260_s17 + $0xa0] sm:$0xff] %vm1896_vm3, %v4531_v20  ;;  %4552 = vpow2.f32 %v3728_v13  ;;  %v2561_v23 = vpop.xlane.xlu1 %2560 }
 0x4a4   : > { %v4535_v26 = vpop.eup %4534  ;;  %3470 = vst.msk [vmem:[%s5260_s17 + $0xa8] sm:$0xff] %vm1896_vm3, %v4533_v24  ;;  %v3792_v27 = vmul.f32 -1.442695, %v3032_v21  ;;  %4554 = vpow2.f32 %v3729_v16 }
 0x4a5   : > { %v4537_v28 = vpop.eup %4536  ;;  %3475 = vst.msk [vmem:[%s5260_s17 + $0xd0] sm:$0xff] %vm1896_vm3, %v4535_v26  ;;  %4556 = vpow2.f32 %v3734_v18  ;;  %v2558_v18 = vpop.xlane.xlu0 %2557 }
 0x4a6   : > { %v4539_v30 = vpop.eup %4538  ;;  %4558 = vpow2.f32 %v3792_v27  ;;  %v2836_v31 = vadd.f32 1.0, %v4537_v28  ;;  %v3742_v26 = vmul.f32 -1.442695, %v2558_v18 }
 0x4a7   : > { %v4541_v33 = vpop.eup %4540  ;;  %3476 = vst.msk [vmem:[%s5260_s17 + $0xd8] sm:$0xff] %vm1896_vm3, %v4539_v30  ;;  %4560 = vpow2.f32 %v3735_v25 }
 0x4a8   : > { %v4543_v35 = vpop.eup %4542  ;;  %v3029_v36 = vmul.f32 %v4541_v33, %v5242_v61  ;;  %4562 = vrcp.f32 %v2836_v31 }
 0x4a9   : > { %v4545_v38 = vpop.eup %4544  ;;  %3473 = vst.msk [vmem:[%s5260_s17 + $0xc0] sm:$0xff] %vm1896_vm3, %v4543_v35  ;;  %4564 = vpow2.f32 %v3732_v29  ;;  %v5350_v29 = vld [vmem:[%s5457_s6] ss:$0 sm:$0xff] }
 0x4aa   : > { %v4547_v39 = vpop.eup %4546  ;;  %v3789_v40 = vmul.f32 -1.442695, %v3029_v36  ;;  %v2837_v41 = vadd.f32 1.0, %v4545_v38  ;;  %4566 = vpow2.f32 %v3733_v32 }
 0x4ab   : > { %v4549_v43 = vpop.eup %4548  ;;  %3474 = vst.msk [vmem:[%s5260_s17 + $0xc8] sm:$0xff] %vm1896_vm3, %v4547_v39  ;;  %4568 = vpow2.f32 %v3738_v34 }
 0x4ac   : > { %v4551_v45 = vpop.eup %4550  ;;  %4570 = vpow2.f32 %v3789_v40  ;;  %v3030_v46 = vmul.f32 %v4549_v43, %v5242_v61 }
 0x4ad   : > { %v4553_v47 = vpop.eup %4552  ;;  %3479 = vst.msk [vmem:[%s5260_s17 + $0xf0] sm:$0xff] %vm1896_vm3, %v4551_v45  ;;  %4572 = vrcp.f32 %v2837_v41 }
 0x4ae   : > { %v4555_v48 = vpop.eup %4554  ;;  %v3790_v49 = vmul.f32 -1.442695, %v3030_v46  ;;  %v2834_v50 = vadd.f32 1.0, %v4553_v47  ;;  %4574 = vpow2.f32 %v3739_v42  ;;  %v3743_v42 = vmul.f32 -1.442695, %v2561_v23 }
 0x4af   : > { %v4557_v51 = vpop.eup %4556  ;;  %v2835_v52 = vadd.f32 1.0, %v4555_v48  ;;  %4576 = vpow2.f32 %v3736_v44  ;;  %v2552_v48 = vpop.xlane.xlu0 %2551 }
 0x4b0   : > { %v4559_v53 = vpop.eup %4558  ;;  %4578 = vpow2.f32 %v3790_v49  ;;  %v2840_v54 = vadd.f32 1.0, %v4557_v51 }
 0x4b1   : > { %v4561_v55 = vpop.eup %4560  ;;  %v3288_v56 = vadd.f32 1.0, %v4559_v53  ;;  %4580 = vrcp.f32 %v2834_v50 }
 0x4b2   : > { %v4563_v57 = vpop.eup %4562  ;;  %4582 = vrcp.f32 %v2835_v52  ;;  %v2841_v58 = vadd.f32 1.0, %v4561_v55 }
 0x4b3   : > { %v4565_v59 = vpop.eup %4564  ;;  %4584 = vrcp.f32 %v3288_v56  ;;  %v3035_v60 = vmul.f32 %v4563_v57, %v5242_v61  ;;  %v2555_v56 = vpop.xlane.xlu1 %2554 }
 0x4b4   : > { %v4567_v62 = vpop.eup %4566  ;;  %4586 = vrcp.f32 %v2840_v54  ;;  %v2838_v63 = vadd.f32 1.0, %v4565_v59 }
 0x4b5   : > { %v4569_v0 = vpop.eup %4568  ;;  %v3795_v1 = vmul.f32 -1.442695, %v3035_v60  ;;  %4588 = vrcp.f32 %v2841_v58  ;;  %v2839_v2 = vadd.f32 1.0, %v4567_v62 }
 0x4b6   : > { %v4571_v3 = vpop.eup %4570  ;;  %4590 = vrcp.f32 %v2838_v63  ;;  %v2844_v4 = vadd.f32 1.0, %v4569_v0 }
 0x4b7   : > { %v4573_v5 = vpop.eup %4572  ;;  %v3285_v6 = vadd.f32 1.0, %v4571_v3  ;;  %4592 = vpow2.f32 %v3795_v1  ;;  %v2570_v1 = vpop.xlane.xlu0 %2569 }
 0x4b8   : > { %v4575_v7 = vpop.eup %4574  ;;  %v3036_v8 = vmul.f32 %v4573_v5, %v5242_v61  ;;  %4594 = vrcp.f32 %v2839_v2 }
 0x4b9   : > { %v4577_v10 = vpop.eup %4576  ;;  %4596 = vrcp.f32 %v3285_v6  ;;  %v2845_v11 = vadd.f32 1.0, %v4575_v7  ;;  %v2573_v7 = vpop.xlane.xlu1 %2572 }
 0x4ba   : > { %v4579_v12 = vpop.eup %4578  ;;  %v3796_v13 = vmul.f32 -1.442695, %v3036_v8  ;;  %4598 = vrcp.f32 %v2844_v4  ;;  %v2842_v14 = vadd.f32 1.0, %v4577_v10 }
 0x4bb   : > { %v4581_v15 = vpop.eup %4580  ;;  %v3286_v16 = vadd.f32 1.0, %v4579_v12  ;;  %4600 = vrcp.f32 %v2845_v11 }
 0x4bc   : > { %v4583_v19 = vpop.eup %4582  ;;  %4602 = vpow2.f32 %v3796_v13  ;;  %v3033_v20 = vmul.f32 %v4581_v15, %v5242_v61  ;;  %v2564_v15 = vpop.xlane.xlu0 %2563 }
 0x4bd   : > { %v4585_v21 = vpop.eup %4584  ;;  %4604 = vrcp.f32 %v3286_v16  ;;  %v3034_v22 = vmul.f32 %v4583_v19, %v5242_v61 }
 0x4be   : > { %v4587_v24 = vpop.eup %4586  ;;  %3480 = vst.msk [vmem:[%s5260_s17 + $0xf8] sm:$0xff] %vm1896_vm3, %v4585_v21  ;;  %v3793_v25 = vmul.f32 -1.442695, %v3033_v20  ;;  %4606 = vrcp.f32 %v2842_v14  ;;  %v3740_v14 = vmul.f32 -1.442695, %v2552_v48 }
 0x4bf   : > { %v4589_v27 = vpop.eup %4588  ;;  %v3794_v28 = vmul.f32 -1.442695, %v3034_v22  ;;  %v3039_v30 = vmul.f32 %v5350_v29, %v4587_v24  ;;  %4608 = vpow2.f32 %v3737_v17  ;;  %v3741_v21 = vmul.f32 -1.442695, %v2555_v56  ;;  %v2567_v22 = vpop.xlane.xlu1 %2566 }
 0x4c0   : > { %v4591_v31 = vpop.eup %4590  ;;  %4610 = vpow2.f32 %v3793_v25  ;;  %v3040_v61 = vmul.f32 %v5350_v29, %v4589_v27 }
 0x4c1   : > { %v4593_v32 = vpop.eup %4592  ;;  %4612 = vpow2.f32 %v3794_v28  ;;  %v3799_v33 = vmul.f32 -1.442695, %v3039_v30  ;;  %v3037_v34 = vmul.f32 %v5350_v29, %v4591_v31  ;;  %v2582_v31 = vpop.xlane.xlu0 %2581 }
 0x4c2   : > { %v4595_v35 = vpop.eup %4594  ;;  %v3291_v36 = vadd.f32 1.0, %v4593_v32  ;;  %v3800_v37 = vmul.f32 -1.442695, %v3040_v61  ;;  %4614 = vpow2.f32 %v3742_v26  ;;  %v3746_v26 = vmul.f32 -1.442695, %v2570_v1 }
 0x4c3   : > { %v4597_v38 = vpop.eup %4596  ;;  %4616 = vpow2.f32 %v3799_v33  ;;  %v3797_v39 = vmul.f32 -1.442695, %v3037_v34  ;;  %v3038_v40 = vmul.f32 %v5350_v29, %v4595_v35  ;;  %v3747_v33 = vmul.f32 -1.442695, %v2573_v7 }
 0x4c4   : > { %v4599_v41 = vpop.eup %4598  ;;  %3477 = vst.msk [vmem:[%s5260_s17 + $0xe0] sm:$0xff] %vm1896_vm3, %v4597_v38  ;;  %4618 = vrcp.f32 %v3291_v36  ;;  %v3744_v35 = vmul.f32 -1.442695, %v2564_v15  ;;  %v2585_v38 = vpop.xlane.xlu1 %2584 }
 0x4c5   : > { %v4601_v43 = vpop.eup %4600  ;;  %4620 = vpow2.f32 %v3800_v37  ;;  %v3798_v44 = vmul.f32 -1.442695, %v3038_v40  ;;  %v3043_v45 = vmul.f32 %v5350_v29, %v4599_v41  ;;  %v3745_v37 = vmul.f32 -1.442695, %v2567_v22 }
 0x4c6   : > { %v4603_v46 = vpop.eup %4602  ;;  %4622 = vpow2.f32 %v3797_v39  ;;  %v3044_v47 = vmul.f32 %v5350_v29, %v4601_v43 }
 0x4c7   : > { %v4605_v49 = vpop.eup %4604  ;;  %v3292_v50 = vadd.f32 1.0, %v4603_v46  ;;  %4624 = vpow2.f32 %v3798_v44  ;;  %v3803_v51 = vmul.f32 -1.442695, %v3043_v45  ;;  %v3751_v45 = vmul.f32 -1.442695, %v2585_v38  ;;  %v2576_v46 = vpop.xlane.xlu0 %2575 }
 0x4c8   : > { %v4607_v52 = vpop.eup %4606  ;;  %3478 = vst.msk [vmem:[%s5260_s17 + $0xe8] sm:$0xff] %vm1896_vm3, %v4605_v49  ;;  %v3804_v53 = vmul.f32 -1.442695, %v3044_v47  ;;  %4626 = vpow2.f32 %v3743_v42  ;;  %v3750_v42 = vmul.f32 -1.442695, %v2582_v31 }
 0x4c9   : > { %v4609_v54 = vpop.eup %4608  ;;  %4628 = vrcp.f32 %v3292_v50  ;;  %v3041_v55 = vmul.f32 %v5350_v29, %v4607_v52  ;;  %v3748_v52 = vmul.f32 -1.442695, %v2576_v46 }
 0x4ca   : > { %v4611_v57 = vpop.eup %4610  ;;  %4630 = vpow2.f32 %v3803_v51  ;;  %v2843_v58 = vadd.f32 1.0, %v4609_v54 }
 0x4cb   : > { %v4613_v59 = vpop.eup %4612  ;;  %v3289_v60 = vadd.f32 1.0, %v4611_v57  ;;  %4632 = vpow2.f32 %v3804_v53  ;;  %v3801_v62 = vmul.f32 -1.442695, %v3041_v55  ;;  %v2579_v55 = vpop.xlane.xlu1 %2578 }
 0x4cc   : > { %v4615_v63 = vpop.eup %4614  ;;  %v3290_v0 = vadd.f32 1.0, %v4613_v59  ;;  %4634 = vrcp.f32 %v2843_v58 }
 0x4cd   : > { %v4617_v2 = vpop.eup %4616  ;;  %4636 = vrcp.f32 %v3289_v60  ;;  %v2848_v3 = vadd.f32 1.0, %v4615_v63 }
 0x4ce   : > { %v4619_v4 = vpop.eup %4618  ;;  %4638 = vrcp.f32 %v3290_v0  ;;  %v3295_v5 = vadd.f32 1.0, %v4617_v2 }
 0x4cf   : > { %v4621_v6 = vpop.eup %4620  ;;  %3483 = vst.msk [vmem:[%s5260_s17 + $0x110] sm:$0xff] %vm1896_vm3, %v4619_v4  ;;  %4640 = vpow2.f32 %v3801_v62  ;;  %v3749_v62 = vmul.f32 -1.442695, %v2579_v55 }
 0x4d0   : > { %v4623_v8 = vpop.eup %4622  ;;  %4642 = vrcp.f32 %v3295_v5  ;;  %v3296_v9 = vadd.f32 1.0, %v4621_v6  ;;  %v2594_v6 = vpop.xlane.xlu0 %2593 }
 0x4d1   : > { %v4625_v10 = vpop.eup %4624  ;;  %v3293_v11 = vadd.f32 1.0, %v4623_v8  ;;  %4644 = vrcp.f32 %v2848_v3 }
 0x4d2   : > { %v4627_v12 = vpop.eup %4626  ;;  %4646 = vrcp.f32 %v3296_v9  ;;  %v3294_v13 = vadd.f32 1.0, %v4625_v10 }
 0x4d3   : > { %v4629_v16 = vpop.eup %4628  ;;  %4648 = vrcp.f32 %v3293_v11  ;;  %v2849_v17 = vadd.f32 1.0, %v4627_v12 }
 0x4d4   : > { %v4631_v18 = vpop.eup %4630  ;;  %3484 = vst.msk [vmem:[%s5260_s17 + $0x118] sm:$0xff] %vm1896_vm3, %v4629_v16  ;;  %4650 = vrcp.f32 %v3294_v13  ;;  %v3754_v13 = vmul.f32 -1.442695, %v2594_v6  ;;  %v2597_v16 = vpop.xlane.xlu1 %2596 }
 0x4d5   : > { %v4633_v19 = vpop.eup %4632  ;;  %v3299_v20 = vadd.f32 1.0, %v4631_v18  ;;  %4652 = vrcp.f32 %v2849_v17 }
 0x4d6   : > { %v4635_v24 = vpop.eup %4634  ;;  %v3300_v25 = vadd.f32 1.0, %v4633_v19  ;;  %4654 = vpow2.f32 %v3740_v14 }
 0x4d7   : > { %v4637_v27 = vpop.eup %4636  ;;  %4656 = vrcp.f32 %v3299_v20  ;;  %v3042_v28 = vmul.f32 %v5350_v29, %v4635_v24 }
 0x4d8   : > { %v4639_v30 = vpop.eup %4638  ;;  %3481 = vst.msk [vmem:[%s5260_s17 + $0x100] sm:$0xff] %vm1896_vm3, %v4637_v27  ;;  %4658 = vrcp.f32 %v3300_v25  ;;  %v3755_v25 = vmul.f32 -1.442695, %v2597_v16  ;;  %v2591_v38 = vpop.xlane.xlu1 %2590 }
 0x4d9   : > { %v4641_v61 = vpop.eup %4640  ;;  %3482 = vst.msk [vmem:[%s5260_s17 + $0x108] sm:$0xff] %vm1896_vm3, %v4639_v30  ;;  %v3802_v32 = vmul.f32 -1.442695, %v3042_v28  ;;  %4660 = vpow2.f32 %v3741_v21  ;;  %v2588_v28 = vpop.xlane.xlu0 %2587  ;;  %v3753_v46 = vmul.f32 -1.442695, %v2591_v38 }
 0x4da   : > { %v4643_v34 = vpop.eup %4642  ;;  %v3297_v23 = vadd.f32 1.0, %v4641_v61  ;;  %4662 = vpow2.f32 %v3746_v26 }
 0x4db   : > { %v4645_v36 = vpop.eup %4644  ;;  %3487 = vst.msk [vmem:[%s5260_s17 + $0x130] sm:$0xff] %vm1896_vm3, %v4643_v34  ;;  %4664 = vpow2.f32 %v3802_v32 }
 0x4dc   : > { %v4647_v39 = vpop.eup %4646  ;;  %4666 = vrcp.f32 %v3297_v23  ;;  %v3047_v40 = vmul.f32 %v5350_v29, %v4645_v36 }
 0x4dd   : > { %v4649_v41 = vpop.eup %4648  ;;  %3488 = vst.msk [vmem:[%s5260_s17 + $0x138] sm:$0xff] %vm1896_vm3, %v4647_v39  ;;  %4668 = vpow2.f32 %v3747_v33 }
 0x4de   : > { %v4651_v43 = vpop.eup %4650  ;;  %3485 = vst.msk [vmem:[%s5260_s17 + $0x120] sm:$0xff] %vm1896_vm3, %v4649_v41  ;;  %v3807_v44 = vmul.f32 -1.442695, %v3047_v40  ;;  %4670 = vpow2.f32 %v3744_v35  ;;  %v3752_v35 = vmul.f32 -1.442695, %v2588_v28 }
 0x4df   : > { %v4653_v47 = vpop.eup %4652  ;;  %3486 = vst.msk [vmem:[%s5260_s17 + $0x128] sm:$0xff] %vm1896_vm3, %v4651_v43  ;;  %4672 = vpow2.f32 %v3745_v37 }
 0x4e0   : > { %v4655_v48 = vpop.eup %4654  ;;  %4674 = vpow2.f32 %v3807_v44  ;;  %v3048_v49 = vmul.f32 %v5350_v29, %v4653_v47 }
 0x4e1   : > { %v4657_v50 = vpop.eup %4656  ;;  %v2846_v51 = vadd.f32 1.0, %v4655_v48  ;;  %4676 = vpow2.f32 %v3750_v42 }
 0x4e2   : > { %v4659_v53 = vpop.eup %4658  ;;  %3491 = vst.msk [vmem:[%s5260_s17 + $0x150] sm:$0xff] %vm1896_vm3, %v4657_v50  ;;  %v3808_v54 = vmul.f32 -1.442695, %v3048_v49  ;;  %4678 = vpow2.f32 %v3751_v45 }
 0x4e3   : > { %v4661_v56 = vpop.eup %4660  ;;  %3492 = vst.msk [vmem:[%s5260_s17 + $0x158] sm:$0xff] %vm1896_vm3, %v4659_v53  ;;  %4680 = vrcp.f32 %v2846_v51 }
 0x4e4   : > { %v4663_v57 = vpop.eup %4662  ;;  %4682 = vpow2.f32 %v3808_v54  ;;  %v2847_v58 = vadd.f32 1.0, %v4661_v56 }
 0x4e5   : > { %v4665_v59 = vpop.eup %4664  ;;  %v2852_v60 = vadd.f32 1.0, %v4663_v57  ;;  %4684 = vpow2.f32 %v3748_v52 }
 0x4e6   : > { %v4667_v63 = vpop.eup %4666  ;;  %v3298_v0 = vadd.f32 1.0, %v4665_v59  ;;  %4686 = vrcp.f32 %v2847_v58 }
 0x4e7   : > { %v4669_v1 = vpop.eup %4668  ;;  %3489 = vst.msk [vmem:[%s5260_s17 + $0x140] sm:$0xff] %vm1896_vm3, %v4667_v63  ;;  %4688 = vrcp.f32 %v2852_v60 }
 0x4e8   : > { %v4671_v2 = vpop.eup %4670  ;;  %4690 = vrcp.f32 %v3298_v0  ;;  %v2853_v3 = vadd.f32 1.0, %v4669_v1 }
 0x4e9   : > { %v4673_v4 = vpop.eup %4672  ;;  %v2850_v5 = vadd.f32 1.0, %v4671_v2  ;;  %4692 = vpow2.f32 %v3749_v62 }
 0x4ea   : > { %v4675_v7 = vpop.eup %4674  ;;  %4694 = vrcp.f32 %v2853_v3  ;;  %v2851_v8 = vadd.f32 1.0, %v4673_v4 }
 0x4eb   : > { %v4677_v9 = vpop.eup %4676  ;;  %v3303_v10 = vadd.f32 1.0, %v4675_v7  ;;  %4696 = vrcp.f32 %v2850_v5 }
 0x4ec   : > { %v4679_v11 = vpop.eup %4678  ;;  %4698 = vrcp.f32 %v2851_v8  ;;  %v2856_v12 = vadd.f32 1.0, %v4677_v9 }
 0x4ed   : > { %v4681_v14 = vpop.eup %4680  ;;  %4700 = vrcp.f32 %v3303_v10  ;;  %v2857_v15 = vadd.f32 1.0, %v4679_v11 }
 0x4ee   : > { %v4683_v17 = vpop.eup %4682  ;;  %v3045_v18 = vmul.f32 %v5350_v29, %v4681_v14  ;;  %4702 = vrcp.f32 %v2856_v12  ;;  %v2600_v14 = vpop.xlane.xlu0 %2599 }
 0x4ef   : > { %v4685_v19 = vpop.eup %4684  ;;  %v3304_v20 = vadd.f32 1.0, %v4683_v17  ;;  %4704 = vrcp.f32 %v2857_v15  ;;  %v2603_v17 = vpop.xlane.xlu1 %2602 }
 0x4f0   : > { %v4687_v21 = vpop.eup %4686  ;;  %v3805_v22 = vmul.f32 -1.442695, %v3045_v18  ;;  %v2854_v24 = vadd.f32 1.0, %v4685_v19  ;;  %4706 = vpow2.f32 %v3754_v13 }
 0x4f1   : > { %v4689_v26 = vpop.eup %4688  ;;  %4708 = vrcp.f32 %v3304_v20  ;;  %v3046_v27 = vmul.f32 %v5350_v29, %v4687_v21 }
 0x4f2   : > { %v4691_v30 = vpop.eup %4690  ;;  %4710 = vpow2.f32 %v3805_v22  ;;  %v3051_v31 = vmul.f32 %v5350_v29, %v4689_v26 }
 0x4f3   : > { %v4693_v61 = vpop.eup %4692  ;;  %3490 = vst.msk [vmem:[%s5260_s17 + $0x148] sm:$0xff] %vm1896_vm3, %v4691_v30  ;;  %v3806_v32 = vmul.f32 -1.442695, %v3046_v27  ;;  %4712 = vrcp.f32 %v2854_v24  ;;  %v3757_v27 = vmul.f32 -1.442695, %v2603_v17 }
 0x4f4   : > { %v4695_v33 = vpop.eup %4694  ;;  %v3811_v34 = vmul.f32 -1.442695, %v3051_v31  ;;  %v2855_v23 = vadd.f32 1.0, %v4693_v61  ;;  %4714 = vpow2.f32 %v3755_v25  ;;  %v3756_v25 = vmul.f32 -1.442695, %v2600_v14  ;;  %v2606_v31 = vpop.xlane.xlu0 %2605 }
 0x4f5   : > { %v4697_v36 = vpop.eup %4696  ;;  %4716 = vpow2.f32 %v3806_v32  ;;  %v3052_v37 = vmul.f32 %v5350_v29, %v4695_v33  ;;  %v2609_v33 = vpop.xlane.xlu1 %2608 }
 0x4f6   : > { %v4699_v39 = vpop.eup %4698  ;;  %4718 = vpow2.f32 %v3811_v34  ;;  %v3049_v40 = vmul.f32 %v5350_v29, %v4697_v36 }
 0x4f7   : > { %v4701_v41 = vpop.eup %4700  ;;  %v3812_v42 = vmul.f32 -1.442695, %v3052_v37  ;;  %v3050_v43 = vmul.f32 %v5350_v29, %v4699_v39  ;;  %4720 = vrcp.f32 %v2855_v23  ;;  %v3758_v37 = vmul.f32 -1.442695, %v2606_v31 }
 0x4f8   : > { %v4703_v44 = vpop.eup %4702  ;;  %3495 = vst.msk [vmem:[%s5260_s17 + $0x170] sm:$0xff] %vm1896_vm3, %v4701_v41  ;;  %v3809_v45 = vmul.f32 -1.442695, %v3049_v40  ;;  %4722 = vpow2.f32 %v3752_v35  ;;  %v3759_v40 = vmul.f32 -1.442695, %v2609_v33 }
 0x4f9   : > { %v4705_v47 = vpop.eup %4704  ;;  %4724 = vpow2.f32 %v3812_v42  ;;  %v3810_v48 = vmul.f32 -1.442695, %v3050_v43  ;;  %v3055_v49 = vmul.f32 %v5350_v29, %v4703_v44 }
 0x4fa   : > { %v4707_v50 = vpop.eup %4706  ;;  %4726 = vpow2.f32 %v3809_v45  ;;  %v3056_v51 = vmul.f32 %v5350_v29, %v4705_v47 }
 0x4fb   : > { %v4709_v52 = vpop.eup %4708  ;;  %4728 = vpow2.f32 %v3810_v48  ;;  %v3815_v53 = vmul.f32 -1.442695, %v3055_v49  ;;  %v2860_v56 = vadd.f32 1.0, %v4707_v50 }
 0x4fc   : > { %v4711_v54 = vpop.eup %4710  ;;  %3496 = vst.msk [vmem:[%s5260_s17 + $0x178] sm:$0xff] %vm1896_vm3, %v4709_v52  ;;  %v3816_v55 = vmul.f32 -1.442695, %v3056_v51  ;;  %4730 = vpow2.f32 %v3753_v46 }
 0x4fd   : > { %v4713_v57 = vpop.eup %4712  ;;  %v3301_v58 = vadd.f32 1.0, %v4711_v54  ;;  %4732 = vpow2.f32 %v3815_v53 }
 0x4fe   : > { %v4715_v59 = vpop.eup %4714  ;;  %4734 = vpow2.f32 %v3816_v55  ;;  %v3053_v60 = vmul.f32 %v5350_v29, %v4713_v57 }
 0x4ff   : > { %v4717_v62 = vpop.eup %4716  ;;  %4736 = vrcp.f32 %v3301_v58  ;;  %v2861_v63 = vadd.f32 1.0, %v4715_v59 }
 0x500   : > { %v4719_v0 = vpop.eup %4718  ;;  %v3302_v1 = vadd.f32 1.0, %v4717_v62  ;;  %v3813_v2 = vmul.f32 -1.442695, %v3053_v60  ;;  %4738 = vrcp.f32 %v2860_v56 }
 0x501   : > { %v4721_v3 = vpop.eup %4720  ;;  %v3307_v4 = vadd.f32 1.0, %v4719_v0  ;;  %4740 = vrcp.f32 %v2861_v63 }
 0x502   : > { %v4723_v5 = vpop.eup %4722  ;;  %4742 = vrcp.f32 %v3302_v1  ;;  %v3054_v6 = vmul.f32 %v5350_v29, %v4721_v3 }
 0x503   : > { %v4725_v7 = vpop.eup %4724  ;;  %4744 = vrcp.f32 %v3307_v4  ;;  %v2858_v8 = vadd.f32 1.0, %v4723_v5 }
 0x504   : > { %v4727_v9 = vpop.eup %4726  ;;  %v3308_v10 = vadd.f32 1.0, %v4725_v7  ;;  %4746 = vpow2.f32 %v3813_v2  ;;  %v3814_v13 = vmul.f32 -1.442695, %v3054_v6 }
 0x505   : > { %v4729_v11 = vpop.eup %4728  ;;  %v3305_v12 = vadd.f32 1.0, %v4727_v9  ;;  %4748 = vrcp.f32 %v2858_v8 }
 0x506   : > { %v4731_v15 = vpop.eup %4730  ;;  %4750 = vrcp.f32 %v3308_v10  ;;  %v3306_v16 = vadd.f32 1.0, %v4729_v11 }
 0x507   : > { %v4733_v18 = vpop.eup %4732  ;;  %4752 = vrcp.f32 %v3305_v12  ;;  %v2859_v21 = vadd.f32 1.0, %v4731_v15 }
 0x508   : > { %v4735_v19 = vpop.eup %4734  ;;  %4754 = vrcp.f32 %v3306_v16  ;;  %v3311_v20 = vadd.f32 1.0, %v4733_v18 }
 0x509   : > { %v4737_v22 = vpop.eup %4736  ;;  %v3312_v24 = vadd.f32 1.0, %v4735_v19  ;;  %4756 = vpow2.f32 %v3814_v13 }
 0x50a   : > { %v4739_v26 = vpop.eup %4738  ;;  %3493 = vst.msk [vmem:[%s5260_s17 + $0x160] sm:$0xff] %vm1896_vm3, %v4737_v22  ;;  %4758 = vrcp.f32 %v3311_v20 }
 0x50b   : > { %v4741_v28 = vpop.eup %4740  ;;  %4760 = vrcp.f32 %v3312_v24  ;;  %v3059_v30 = vmul.f32 %v5350_v29, %v4739_v26 }
 0x50c   : > { %v4743_v61 = vpop.eup %4742  ;;  %v3060_v32 = vmul.f32 %v5350_v29, %v4741_v28  ;;  %4762 = vrcp.f32 %v2859_v21 }
 0x50d   : > { %v4745_v34 = vpop.eup %4744  ;;  %3494 = vst.msk [vmem:[%s5260_s17 + $0x168] sm:$0xff] %vm1896_vm3, %v4743_v61  ;;  %v3819_v23 = vmul.f32 -1.442695, %v3059_v30  ;;  %4764 = vpow2.f32 %v3756_v25 }
 0x50e   : > { %v4747_v35 = vpop.eup %4746  ;;  %3499 = vst.msk [vmem:[%s5260_s17 + $0x190] sm:$0xff] %vm1896_vm3, %v4745_v34  ;;  %v3820_v36 = vmul.f32 -1.442695, %v3060_v32  ;;  %4766 = vpow2.f32 %v3757_v27 }
 0x50f   : > { %v4749_v38 = vpop.eup %4748  ;;  %v3309_v39 = vadd.f32 1.0, %v4747_v35  ;;  %4768 = vpow2.f32 %v3819_v23 }
 0x510   : > { %v4751_v41 = vpop.eup %4750  ;;  %4770 = vpow2.f32 %v3820_v36  ;;  %v3057_v42 = vmul.f32 %v5350_v29, %v4749_v38 }
 0x511   : > { %v4753_v43 = vpop.eup %4752  ;;  %3500 = vst.msk [vmem:[%s5260_s17 + $0x198] sm:$0xff] %vm1896_vm3, %v4751_v41  ;;  %4772 = vrcp.f32 %v3309_v39 }
 0x512   : > { %v4755_v44 = vpop.eup %4754  ;;  %3497 = vst.msk [vmem:[%s5260_s17 + $0x180] sm:$0xff] %vm1896_vm3, %v4753_v43  ;;  %v3817_v45 = vmul.f32 -1.442695, %v3057_v42  ;;  %4774 = vpow2.f32 %v3758_v37 }
 0x513   : > { %v4757_v46 = vpop.eup %4756  ;;  %3498 = vst.msk [vmem:[%s5260_s17 + $0x188] sm:$0xff] %vm1896_vm3, %v4755_v44  ;;  %4776 = vpow2.f32 %v3759_v40 }
 0x514   : > { %v4759_v47 = vpop.eup %4758  ;;  %v3310_v48 = vadd.f32 1.0, %v4757_v46  ;;  %4778 = vpow2.f32 %v3817_v45 }
 0x515   : > { %v4761_v49 = vpop.eup %4760  ;;  %3503 = vst.msk [vmem:[%s5260_s17 + $0x1b0] sm:$0xff] %vm1896_vm3, %v4759_v47 }
 0x516   : > { %v4763_v50 = vpop.eup %4762  ;;  %3504 = vst.msk [vmem:[%s5260_s17 + $0x1b8] sm:$0xff] %vm1896_vm3, %v4761_v49  ;;  %4780 = vrcp.f32 %v3310_v48 }
 0x517   : > { %v4765_v51 = vpop.eup %4764  ;;  %v3058_v52 = vmul.f32 %v5350_v29, %v4763_v50 }
 0x518   : > { %v4767_v53 = vpop.eup %4766  ;;  %v2862_v54 = vadd.f32 1.0, %v4765_v51 }
 0x519   : > { %v4769_v55 = vpop.eup %4768  ;;  %v3818_v56 = vmul.f32 -1.442695, %v3058_v52  ;;  %v2863_v59 = vadd.f32 1.0, %v4767_v53 }
 0x51a   : > { %v4771_v57 = vpop.eup %4770  ;;  %v3315_v58 = vadd.f32 1.0, %v4769_v55  ;;  %4782 = vrcp.f32 %v2862_v54 }
 0x51b   : > { %v4773_v60 = vpop.eup %4772  ;;  %v3316_v62 = vadd.f32 1.0, %v4771_v57  ;;  %4784 = vpow2.f32 %v3818_v56 }
 0x51c   : > { %v4775_v63 = vpop.eup %4774  ;;  %3501 = vst.msk [vmem:[%s5260_s17 + $0x1a0] sm:$0xff] %vm1896_vm3, %v4773_v60  ;;  %4786 = vrcp.f32 %v3315_v58 }
 0x51d   : > { %v4777_v0 = vpop.eup %4776  ;;  %4788 = vrcp.f32 %v3316_v62  ;;  %v2864_v1 = vadd.f32 1.0, %v4775_v63 }
 0x51e   : > { %v4779_v2 = vpop.eup %4778  ;;  %4790 = vrcp.f32 %v2863_v59  ;;  %v2865_v3 = vadd.f32 1.0, %v4777_v0 }
 0x51f   : > { %v3313_v4 = vadd.f32 1.0, %v4779_v2  ;;  %4792 = vrcp.f32 %v2864_v1 }
 0x520   : > { %v4781_v5 = vpop.eup %4780  ;;  %4794 = vrcp.f32 %v2865_v3 }
 0x521   : > { %3502 = vst.msk [vmem:[%s5260_s17 + $0x1a8] sm:$0xff] %vm1896_vm3, %v4781_v5  ;;  %4796 = vrcp.f32 %v3313_v4 }
 0x524   : > { %v4783_v6 = vpop.eup %4782 }
 0x525   : > { %v4785_v7 = vpop.eup %4784  ;;  %v3061_v8 = vmul.f32 %v5350_v29, %v4783_v6 }
 0x526   : > { %v4787_v9 = vpop.eup %4786  ;;  %v3314_v10 = vadd.f32 1.0, %v4785_v7 }
 0x527   : > { %v4789_v11 = vpop.eup %4788  ;;  %3507 = vst.msk [vmem:[%s5260_s17 + $0x1d0] sm:$0xff] %vm1896_vm3, %v4787_v9  ;;  %v3821_v12 = vmul.f32 -1.442695, %v3061_v8 }
 0x528   : > { %v4791_v13 = vpop.eup %4790  ;;  %3508 = vst.msk [vmem:[%s5260_s17 + $0x1d8] sm:$0xff] %vm1896_vm3, %v4789_v11  ;;  %4798 = vrcp.f32 %v3314_v10 }
 0x529   : > { %v4793_v14 = vpop.eup %4792  ;;  %4800 = vpow2.f32 %v3821_v12  ;;  %v3062_v15 = vmul.f32 %v5350_v29, %v4791_v13 }
 0x52a   : > { %v4795_v16 = vpop.eup %4794  ;;  %v3063_v17 = vmul.f32 %v5350_v29, %v4793_v14 }
 0x52b   : > { %v4797_v18 = vpop.eup %4796  ;;  %v3822_v19 = vmul.f32 -1.442695, %v3062_v15  ;;  %v3064_v20 = vmul.f32 %v5350_v29, %v4795_v16 }
 0x52c   : > { %3505 = vst.msk [vmem:[%s5260_s17 + $0x1c0] sm:$0xff] %vm1896_vm3, %v4797_v18  ;;  %v3823_v21 = vmul.f32 -1.442695, %v3063_v17 }
 0x52d   : > { %4802 = vpow2.f32 %v3822_v19  ;;  %v3824_v22 = vmul.f32 -1.442695, %v3064_v20 }
 0x52e   : > { %4804 = vpow2.f32 %v3823_v21 }
 0x52f   : > { %4806 = vpow2.f32 %v3824_v22 }
 0x532   : > { %v4799_v24 = vpop.eup %4798 }
 0x533   : > { %v4801_v25 = vpop.eup %4800  ;;  %3506 = vst.msk [vmem:[%s5260_s17 + $0x1c8] sm:$0xff] %vm1896_vm3, %v4799_v24 }
 0x534   : > { %v3317_v26 = vadd.f32 1.0, %v4801_v25 }
 0x536   : > { %4808 = vrcp.f32 %v3317_v26 }
 0x537   : > { %v4803_v27 = vpop.eup %4802 }
 0x538   : > { %v4805_v28 = vpop.eup %4804  ;;  %v3318_v29 = vadd.f32 1.0, %v4803_v27 }
 0x539   : > { %v4807_v30 = vpop.eup %4806  ;;  %v3319_v31 = vadd.f32 1.0, %v4805_v28 }
 0x53a   : > { %4810 = vrcp.f32 %v3318_v29  ;;  %v3320_v61 = vadd.f32 1.0, %v4807_v30 }
 0x53b   : > { %4812 = vrcp.f32 %v3319_v31 }
 0x53c   : > { %4814 = vrcp.f32 %v3320_v61 }
 0x540   : > { %v4809_v32 = vpop.eup %4808 }
 0x541   : > { %3509 = vst.msk [vmem:[%s5260_s17 + $0x1e0] sm:$0xff] %vm1896_vm3, %v4809_v32 }
 0x544   : > { %v4811_v33 = vpop.eup %4810 }
 0x545   : > { %v4813_v34 = vpop.eup %4812  ;;  %3510 = vst.msk [vmem:[%s5260_s17 + $0x1e8] sm:$0xff] %vm1896_vm3, %v4811_v33 }
 0x546   : > { %v4815_v23 = vpop.eup %4814  ;;  %3511 = vst.msk [vmem:[%s5260_s17 + $0x1f0] sm:$0xff] %vm1896_vm3, %v4813_v34 }
 0x547   : > { %3512 = vst.msk [vmem:[%s5260_s17 + $0x1f8] sm:$0xff] %vm1896_vm3, %v4815_v23 }
 0x548 PF: > { %s17_s24 = sadd.s32 1, %s4823_s24  }
 0x549   : > { %p14_p4 = scmp.ge.s32.totalorder %s17_s24, 4  }
 0x54b   :  { %16 = sbr.rel (!%p14_p4) target bundleno = 1 (0x1), region = 78 }

</bundles_post_ra>
